<compile_context>
chip_gen: v5e
topology: v5e:2x2
jax: 0.10.0
libtpu: 0.0.40
codegen_flags: <defaults>
</compile_context>

<pallas_src>
import jax
import jax.numpy as jnp
from jax import lax
from jax.experimental import pallas as pl
from jax.experimental.pallas import tpu as pltpu


# ---------------- Kernel A: fused GRU recurrence + inter contraction --------
def gru_inter_kernel(x2_ref, wih_ref, whh_ref, bih_ref, bhh_ref, len_ref,
                     iw_ref, ib_ref, y_ref, gx_scr, rnn_scr):
    T, B, H = rnn_scr.shape

    # (1) Hoisted input projection for all timesteps: one lane-dense matmul,
    #     gate order [r | z | n], b_ih folded in.  No loop-carried dependency.
    gx_scr[...] = (jnp.dot(x2_ref[...], wih_ref[...],
                           preferred_element_type=jnp.float32) + bih_ref[...])

    # (2) Serial recurrence: only h @ W_hh (+ elementwise gates) per step.
    def step(t, h):
        row = pl.multiple_of(t * B, B)
        gx = gx_scr[pl.ds(row, B), :]                                # (B, 3H)
        gh = (jnp.dot(h, whh_ref[...], preferred_element_type=jnp.float32)
              + bhh_ref[...])                                        # (B, 3H)
        r = jax.nn.sigmoid(gx[:, :H] + gh[:, :H])
        z = jax.nn.sigmoid(gx[:, H:2 * H] + gh[:, H:2 * H])
        n = jnp.tanh(gx[:, 2 * H:] + r * gh[:, 2 * H:])              # PyTorch GRU
        h_new = (1.0 - z) * n + z * h
        rnn_scr[t] = h_new
        return h_new

    lax.fori_loop(0, T, step, jnp.zeros((B, H), jnp.float32), unroll=True)

    # (3) Epilogue: pad_packed zero-mask applied once, then the
    #     inter Linear(T->1): y[b,h] = sum_t w[t] * rnn[t,b,h] + bias.
    t_idx = lax.broadcasted_iota(jnp.int32, (T, B, 1), 0)
    mask = t_idx < len_ref[...]                                      # (T, B, 1)
    masked = jnp.where(mask, rnn_scr[...], 0.0)
    y_ref[...] = jnp.sum(masked * iw_ref[...], axis=0) + ib_ref[...]


# ------------------- Kernel B: BatchNorm1d + Linear + log_softmax -----------
def head_kernel(x_ref, gamma_ref, beta_ref, ow_ref, ob_ref, out_ref):
    x = x_ref[...]                                                   # (B, H)
    # BatchNorm1d, training mode: batch statistics, biased variance, eps=1e-5
    mean = jnp.mean(x, axis=0, keepdims=True)
    var = jnp.mean(jnp.square(x - mean), axis=0, keepdims=True)
    bn = (x - mean) * lax.rsqrt(var + 1e-5) * gamma_ref[...] + beta_ref[...]
    logits = (jnp.dot(bn, ow_ref[...], preferred_element_type=jnp.float32)
              + ob_ref[...])
    m = jnp.max(logits, axis=-1, keepdims=True)
    lse = m + jnp.log(jnp.sum(jnp.exp(logits - m), axis=-1, keepdims=True))
    out_ref[...] = logits - lse


# ------------------------------- wrappers ------------------------------------
def _full_specs(shapes):
    # grid=(1,): every operand is a single full-array VMEM block.
    return [pl.BlockSpec(s, lambda i, _n=len(s): (0,) * _n) for s in shapes]


def gru_inter(x2, wih, whh, bih, bhh, lengths_i, iw, ib, T, B, H):
    E = x2.shape[1]
    cost = pl.CostEstimate(
        flops=2 * T * B * E * 3 * H + 2 * T * B * H * 3 * H + 12 * T * B * H,
        transcendentals=3 * T * B * H,
        bytes_accessed=4 * (x2.size + wih.size + whh.size + bih.size + bhh.size
                            + iw.size + ib.size + B * H) + 4 * lengths_i.size,
    )
    return pl.pallas_call(
        gru_inter_kernel,
        grid=(1,),
        in_specs=_full_specs([x2.shape, wih.shape, whh.shape, bih.shape,
                              bhh.shape, lengths_i.shape, iw.shape, ib.shape]),
        out_specs=pl.BlockSpec((B, H), lambda i: (0, 0)),
        out_shape=jax.ShapeDtypeStruct((B, H), jnp.float32),
        scratch_shapes=[pltpu.VMEM((T * B, 3 * H), jnp.float32),   # gx (hoisted)
                        pltpu.VMEM((T, B, H), jnp.float32)],       # rnn_out
        compiler_params=pltpu.CompilerParams(dimension_semantics=("arbitrary",)),
        cost_estimate=cost,
    )(x2, wih, whh, bih, bhh, lengths_i, iw, ib)


def head_forward(inter, params):
    B, H = inter.shape
    n_out = params["out_b"].shape[-1]
    return pl.pallas_call(
        head_kernel,
        grid=(1,),
        in_specs=_full_specs([inter.shape, params["bn_gamma"].shape,
                              params["bn_beta"].shape, params["out_w"].shape,
                              params["out_b"].shape]),
        out_specs=pl.BlockSpec((B, n_out), lambda i: (0, 0)),
        out_shape=jax.ShapeDtypeStruct((B, n_out), jnp.float32),
        compiler_params=pltpu.CompilerParams(dimension_semantics=("arbitrary",)),
    )(inter, params["bn_gamma"], params["bn_beta"],
      params["out_w"], params["out_b"])


@jax.jit
def model4_forward(params, seq, lengths):
    T, B, E = seq.shape
    H = params["whh"].shape[0]
    x2 = seq.astype(jnp.float32).reshape(T * B, E)        # free host-side view
    lengths_i = lengths.astype(jnp.int32).reshape(1, B, 1)

    y_bh = gru_inter(x2, params["wih"], params["whh"], params["bih"],
                     params["bhh"], lengths_i,
                     params["inter_w"], params["inter_b"], T, B, H)

    # torch: Linear over (H, B, T) -> (H, B, 1); .view(B, H) reinterprets the
    # (H, B)-ordered contiguous buffer.  y_bh.T.reshape(B, H) is exactly that.
    inter = y_bh.T.reshape(B, H)
    return head_forward(inter, params)


# ------------------------------- param init ----------------------------------
def init_params(key, E, H, n_out, T):
    ks = jax.random.split(key, 8)
    s = 1.0 / jnp.sqrt(jnp.float32(H))
    # Fused GRU weights, gate order [r | z | n] (PyTorch layout, transposed).
    wih = jax.random.uniform(ks[0], (E, 3 * H), jnp.float32, -s, s)
    whh = jax.random.uniform(ks[1], (H, 3 * H), jnp.float32, -s, s)
    bih = jax.random.uniform(ks[2], (1, 3 * H), jnp.float32, -s, s)
    bhh = jax.random.uniform(ks[3], (1, 3 * H), jnp.float32, -s, s)

    si = 1.0 / jnp.sqrt(jnp.float32(T))
    inter_w = jax.random.uniform(ks[4], (T, 1, 1), jnp.float32, -si, si)
    inter_b = jax.random.uniform(ks[5], (1, 1), jnp.float32, -si, si)

    bn_gamma = jnp.ones((1, H), jnp.float32)     # BatchNorm1d default affine
    bn_beta = jnp.zeros((1, H), jnp.float32)

    so = 1.0 / jnp.sqrt(jnp.float32(H))
    out_w = jax.random.uniform(ks[6], (H, n_out), jnp.float32, -so, so)
    out_b = jax.random.uniform(ks[7], (1, n_out), jnp.float32, -so, so)

    return dict(wih=wih, whh=whh, bih=bih, bhh=bhh,
                inter_w=inter_w, inter_b=inter_b,
                bn_gamma=bn_gamma, bn_beta=bn_beta,
                out_w=out_w, out_b=out_b)


if __name__ == "__main__":
    # B=8 keeps the batch/sublane dim at the native 8-row tile.
    T, B, E, H, n_out = 8, 8, 16, 32, 8
    key = jax.random.PRNGKey(0)
    k_seq, k_par = jax.random.split(key)

    seq = jax.random.normal(k_seq, (T, B, E), jnp.float32)       # time-major
    lengths = jnp.array([8, 8, 7, 6, 5, 4, 3, 2], dtype=jnp.int32)  # desc, max=T
    params = init_params(k_par, E, H, n_out, T)

    out = model4_forward(params, seq, lengths)
    out = jax.block_until_ready(out)
    assert out.shape == (B, n_out)
    assert bool(jnp.all(jnp.isfinite(out)))
    print("KERNEL_OK")
</pallas_src>

<mosaic_0001>
module attributes {stable_mosaic.version = 11 : i64} {
  func.func @gru_inter_kernel(%arg0: i32, %arg1: memref<64x16xf32, #tpu.memory_space<vmem>>, %arg2: memref<16x96xf32, #tpu.memory_space<vmem>>, %arg3: memref<32x96xf32, #tpu.memory_space<vmem>>, %arg4: memref<1x96xf32, #tpu.memory_space<vmem>>, %arg5: memref<1x96xf32, #tpu.memory_space<vmem>>, %arg6: memref<1x8x1xi32, #tpu.memory_space<vmem>>, %arg7: memref<8x1x1xf32, #tpu.memory_space<vmem>>, %arg8: memref<1x1xf32, #tpu.memory_space<vmem>>, %arg9: memref<8x32xf32, #tpu.memory_space<vmem>>, %arg10: memref<64x96xf32, #tpu.memory_space<vmem>>, %arg11: memref<8x8x32xf32, #tpu.memory_space<vmem>>) attributes {dimension_semantics = [#tpu.dimension_semantics<arbitrary>], iteration_bounds = array<i64: 1>, scalar_prefetch = 0 : i64, scratch_operands = 2 : i64, tpu.core_type = #tpu.core_type<tc>, window_params = [{pipeline_mode = #tpu.pipeline_mode<synchronous>, transform_indices = @transform_0, window_bounds = array<i64: 64, 16>}, {pipeline_mode = #tpu.pipeline_mode<synchronous>, transform_indices = @transform_1, window_bounds = array<i64: 16, 96>}, {pipeline_mode = #tpu.pipeline_mode<synchronous>, transform_indices = @transform_2, window_bounds = array<i64: 32, 96>}, {pipeline_mode = #tpu.pipeline_mode<synchronous>, transform_indices = @transform_3, window_bounds = array<i64: 1, 96>}, {pipeline_mode = #tpu.pipeline_mode<synchronous>, transform_indices = @transform_4, window_bounds = array<i64: 1, 96>}, {pipeline_mode = #tpu.pipeline_mode<synchronous>, transform_indices = @transform_5, window_bounds = array<i64: 1, 8, 1>}, {pipeline_mode = #tpu.pipeline_mode<synchronous>, transform_indices = @transform_6, window_bounds = array<i64: 8, 1, 1>}, {pipeline_mode = #tpu.pipeline_mode<synchronous>, transform_indices = @transform_7, window_bounds = array<i64: 1, 1>}, {pipeline_mode = #tpu.pipeline_mode<synchronous>, transform_indices = @transform_8, window_bounds = array<i64: 8, 32>}]} {
    %c0 = arith.constant 0 : index
    %c0_0 = arith.constant 0 : index
    %0 = vector.load %arg1[%c0, %c0_0] : memref<64x16xf32, #tpu.memory_space<vmem>>, vector<64x16xf32>
    %c0_1 = arith.constant 0 : index
    %c0_2 = arith.constant 0 : index
    %1 = vector.load %arg2[%c0_1, %c0_2] : memref<16x96xf32, #tpu.memory_space<vmem>>, vector<16x96xf32>
    %cst = arith.constant dense<0.000000e+00> : vector<64x96xf32>
    %2 = tpu.matmul %0, %1, %cst {dimension_numbers = #tpu.dot_dimension_numbers<[1], [0], [0], [1], [0, 0, 1, 1], [], []>} : vector<64x16xf32>, vector<16x96xf32>, vector<64x96xf32> -> vector<64x96xf32>
    %c0_3 = arith.constant 0 : index
    %c0_4 = arith.constant 0 : index
    %3 = vector.load %arg4[%c0_3, %c0_4] : memref<1x96xf32, #tpu.memory_space<vmem>>, vector<1x96xf32>
    %4 = vector.broadcast %3 : vector<1x96xf32> to vector<64x96xf32>
    %5 = arith.addf %2, %4 : vector<64x96xf32>
    %c0_5 = arith.constant 0 : index
    %c0_6 = arith.constant 0 : index
    %6 = vector.load %arg10[%c0_5, %c0_6] : memref<64x96xf32, #tpu.memory_space<vmem>>, vector<64x96xf32>
    tpu.vector_store %arg10[%c0_5, %c0_6], %5 {strides = array<i32>} : memref<64x96xf32, #tpu.memory_space<vmem>>, vector<64x96xf32>,
    %cst_7 = arith.constant 0.000000e+00 : f32
    %7 = vector.broadcast %cst_7 : f32 to vector<8x32xf32>
    %c0_i32 = arith.constant 0 : i32
    %c8_i32 = arith.constant 8 : i32
    %8 = arith.muli %c0_i32, %c8_i32 : i32
    %9 = tpu.assume_multiple %8, 8 : i32
    %10 = arith.index_cast %9 : i32 to index
    %c0_8 = arith.constant 0 : index
    %11 = vector.load %arg10[%10, %c0_8] : memref<64x96xf32, #tpu.memory_space<vmem>>, vector<8x96xf32>
    %c0_9 = arith.constant 0 : index
    %c0_10 = arith.constant 0 : index
    %12 = vector.load %arg3[%c0_9, %c0_10] : memref<32x96xf32, #tpu.memory_space<vmem>>, vector<32x96xf32>
    %cst_11 = arith.constant dense<0.000000e+00> : vector<8x96xf32>
    %13 = tpu.matmul %7, %12, %cst_11 {dimension_numbers = #tpu.dot_dimension_numbers<[1], [0], [0], [1], [0, 0, 1, 1], [], []>} : vector<8x32xf32>, vector<32x96xf32>, vector<8x96xf32> -> vector<8x96xf32>
    %c0_12 = arith.constant 0 : index
    %c0_13 = arith.constant 0 : index
    %14 = vector.load %arg5[%c0_12, %c0_13] : memref<1x96xf32, #tpu.memory_space<vmem>>, vector<1x96xf32>
    %15 = vector.broadcast %14 : vector<1x96xf32> to vector<8x96xf32>
    %16 = arith.addf %13, %15 : vector<8x96xf32>
    %17 = vector.extract_strided_slice %11 {offsets = [0, 0], sizes = [8, 32], strides = [1, 1]} : vector<8x96xf32> to vector<8x32xf32>
    %18 = vector.extract_strided_slice %16 {offsets = [0, 0], sizes = [8, 32], strides = [1, 1]} : vector<8x96xf32> to vector<8x32xf32>
    %19 = arith.addf %17, %18 : vector<8x32xf32>
    %20 = arith.negf %19 : vector<8x32xf32>
    %21 = math.exp %20 : vector<8x32xf32>
    %cst_14 = arith.constant 1.000000e+00 : f32
    %22 = vector.broadcast %cst_14 : f32 to vector<8x32xf32>
    %23 = arith.addf %22, %21 : vector<8x32xf32>
    %24 = arith.divf %22, %23 : vector<8x32xf32>
    %25 = vector.extract_strided_slice %11 {offsets = [0, 32], sizes = [8, 32], strides = [1, 1]} : vector<8x96xf32> to vector<8x32xf32>
    %26 = vector.extract_strided_slice %16 {offsets = [0, 32], sizes = [8, 32], strides = [1, 1]} : vector<8x96xf32> to vector<8x32xf32>
    %27 = arith.addf %25, %26 : vector<8x32xf32>
    %28 = arith.negf %27 : vector<8x32xf32>
    %29 = math.exp %28 : vector<8x32xf32>
    %cst_15 = arith.constant 1.000000e+00 : f32
    %30 = vector.broadcast %cst_15 : f32 to vector<8x32xf32>
    %31 = arith.addf %30, %29 : vector<8x32xf32>
    %32 = arith.divf %30, %31 : vector<8x32xf32>
    %33 = vector.extract_strided_slice %11 {offsets = [0, 64], sizes = [8, 32], strides = [1, 1]} : vector<8x96xf32> to vector<8x32xf32>
    %34 = vector.extract_strided_slice %16 {offsets = [0, 64], sizes = [8, 32], strides = [1, 1]} : vector<8x96xf32> to vector<8x32xf32>
    %35 = arith.mulf %24, %34 : vector<8x32xf32>
    %36 = arith.addf %33, %35 : vector<8x32xf32>
    %37 = math.tanh %36 : vector<8x32xf32>
    %cst_16 = arith.constant 1.000000e+00 : f32
    %38 = vector.broadcast %cst_16 : f32 to vector<8x32xf32>
    %39 = arith.subf %38, %32 : vector<8x32xf32>
    %40 = arith.mulf %39, %37 : vector<8x32xf32>
    %41 = arith.mulf %32, %7 : vector<8x32xf32>
    %42 = arith.addf %40, %41 : vector<8x32xf32>
    %43 = arith.index_cast %c0_i32 : i32 to index
    %c0_17 = arith.constant 0 : index
    %c0_18 = arith.constant 0 : index
    %44 = vector.load %arg11[%43, %c0_17, %c0_18] : memref<8x8x32xf32, #tpu.memory_space<vmem>>, vector<1x8x32xf32>
    %45 = vector.shape_cast %44 : vector<1x8x32xf32> to vector<8x32xf32>
    %46 = vector.shape_cast %42 : vector<8x32xf32> to vector<1x8x32xf32>
    tpu.vector_store %arg11[%43, %c0_17, %c0_18], %46 {strides = array<i32>} : memref<8x8x32xf32, #tpu.memory_space<vmem>>, vector<1x8x32xf32>,
    %c1_i32 = arith.constant 1 : i32
    %c8_i32_19 = arith.constant 8 : i32
    %47 = arith.muli %c1_i32, %c8_i32_19 : i32
    %48 = tpu.assume_multiple %47, 8 : i32
    %49 = arith.index_cast %48 : i32 to index
    %c0_20 = arith.constant 0 : index
    %50 = vector.load %arg10[%49, %c0_20] : memref<64x96xf32, #tpu.memory_space<vmem>>, vector<8x96xf32>
    %c0_21 = arith.constant 0 : index
    %c0_22 = arith.constant 0 : index
    %51 = vector.load %arg3[%c0_21, %c0_22] : memref<32x96xf32, #tpu.memory_space<vmem>>, vector<32x96xf32>
    %cst_23 = arith.constant dense<0.000000e+00> : vector<8x96xf32>
    %52 = tpu.matmul %42, %51, %cst_23 {dimension_numbers = #tpu.dot_dimension_numbers<[1], [0], [0], [1], [0, 0, 1, 1], [], []>} : vector<8x32xf32>, vector<32x96xf32>, vector<8x96xf32> -> vector<8x96xf32>
    %c0_24 = arith.constant 0 : index
    %c0_25 = arith.constant 0 : index
    %53 = vector.load %arg5[%c0_24, %c0_25] : memref<1x96xf32, #tpu.memory_space<vmem>>, vector<1x96xf32>
    %54 = vector.broadcast %53 : vector<1x96xf32> to vector<8x96xf32>
    %55 = arith.addf %52, %54 : vector<8x96xf32>
    %56 = vector.extract_strided_slice %50 {offsets = [0, 0], sizes = [8, 32], strides = [1, 1]} : vector<8x96xf32> to vector<8x32xf32>
    %57 = vector.extract_strided_slice %55 {offsets = [0, 0], sizes = [8, 32], strides = [1, 1]} : vector<8x96xf32> to vector<8x32xf32>
    %58 = arith.addf %56, %57 : vector<8x32xf32>
    %59 = arith.negf %58 : vector<8x32xf32>
    %60 = math.exp %59 : vector<8x32xf32>
    %cst_26 = arith.constant 1.000000e+00 : f32
    %61 = vector.broadcast %cst_26 : f32 to vector<8x32xf32>
    %62 = arith.addf %61, %60 : vector<8x32xf32>
    %63 = arith.divf %61, %62 : vector<8x32xf32>
    %64 = vector.extract_strided_slice %50 {offsets = [0, 32], sizes = [8, 32], strides = [1, 1]} : vector<8x96xf32> to vector<8x32xf32>
    %65 = vector.extract_strided_slice %55 {offsets = [0, 32], sizes = [8, 32], strides = [1, 1]} : vector<8x96xf32> to vector<8x32xf32>
    %66 = arith.addf %64, %65 : vector<8x32xf32>
    %67 = arith.negf %66 : vector<8x32xf32>
    %68 = math.exp %67 : vector<8x32xf32>
    %cst_27 = arith.constant 1.000000e+00 : f32
    %69 = vector.broadcast %cst_27 : f32 to vector<8x32xf32>
    %70 = arith.addf %69, %68 : vector<8x32xf32>
    %71 = arith.divf %69, %70 : vector<8x32xf32>
    %72 = vector.extract_strided_slice %50 {offsets = [0, 64], sizes = [8, 32], strides = [1, 1]} : vector<8x96xf32> to vector<8x32xf32>
    %73 = vector.extract_strided_slice %55 {offsets = [0, 64], sizes = [8, 32], strides = [1, 1]} : vector<8x96xf32> to vector<8x32xf32>
    %74 = arith.mulf %63, %73 : vector<8x32xf32>
    %75 = arith.addf %72, %74 : vector<8x32xf32>
    %76 = math.tanh %75 : vector<8x32xf32>
    %cst_28 = arith.constant 1.000000e+00 : f32
    %77 = vector.broadcast %cst_28 : f32 to vector<8x32xf32>
    %78 = arith.subf %77, %71 : vector<8x32xf32>
    %79 = arith.mulf %78, %76 : vector<8x32xf32>
    %80 = arith.mulf %71, %42 : vector<8x32xf32>
    %81 = arith.addf %79, %80 : vector<8x32xf32>
    %82 = arith.index_cast %c1_i32 : i32 to index
    %c0_29 = arith.constant 0 : index
    %c0_30 = arith.constant 0 : index
    %83 = vector.load %arg11[%82, %c0_29, %c0_30] : memref<8x8x32xf32, #tpu.memory_space<vmem>>, vector<1x8x32xf32>
    %84 = vector.shape_cast %83 : vector<1x8x32xf32> to vector<8x32xf32>
    %85 = vector.shape_cast %81 : vector<8x32xf32> to vector<1x8x32xf32>
    tpu.vector_store %arg11[%82, %c0_29, %c0_30], %85 {strides = array<i32>} : memref<8x8x32xf32, #tpu.memory_space<vmem>>, vector<1x8x32xf32>,
    %c2_i32 = arith.constant 2 : i32
    %c8_i32_31 = arith.constant 8 : i32
    %86 = arith.muli %c2_i32, %c8_i32_31 : i32
    %87 = tpu.assume_multiple %86, 8 : i32
    %88 = arith.index_cast %87 : i32 to index
    %c0_32 = arith.constant 0 : index
    %89 = vector.load %arg10[%88, %c0_32] : memref<64x96xf32, #tpu.memory_space<vmem>>, vector<8x96xf32>
    %c0_33 = arith.constant 0 : index
    %c0_34 = arith.constant 0 : index
    %90 = vector.load %arg3[%c0_33, %c0_34] : memref<32x96xf32, #tpu.memory_space<vmem>>, vector<32x96xf32>
    %cst_35 = arith.constant dense<0.000000e+00> : vector<8x96xf32>
    %91 = tpu.matmul %81, %90, %cst_35 {dimension_numbers = #tpu.dot_dimension_numbers<[1], [0], [0], [1], [0, 0, 1, 1], [], []>} : vector<8x32xf32>, vector<32x96xf32>, vector<8x96xf32> -> vector<8x96xf32>
    %c0_36 = arith.constant 0 : index
    %c0_37 = arith.constant 0 : index
    %92 = vector.load %arg5[%c0_36, %c0_37] : memref<1x96xf32, #tpu.memory_space<vmem>>, vector<1x96xf32>
    %93 = vector.broadcast %92 : vector<1x96xf32> to vector<8x96xf32>
    %94 = arith.addf %91, %93 : vector<8x96xf32>
    %95 = vector.extract_strided_slice %89 {offsets = [0, 0], sizes = [8, 32], strides = [1, 1]} : vector<8x96xf32> to vector<8x32xf32>
    %96 = vector.extract_strided_slice %94 {offsets = [0, 0], sizes = [8, 32], strides = [1, 1]} : vector<8x96xf32> to vector<8x32xf32>
    %97 = arith.addf %95, %96 : vector<8x32xf32>
    %98 = arith.negf %97 : vector<8x32xf32>
    %99 = math.exp %98 : vector<8x32xf32>
    %cst_38 = arith.constant 1.000000e+00 : f32
    %100 = vector.broadcast %cst_38 : f32 to vector<8x32xf32>
    %101 = arith.addf %100, %99 : vector<8x32xf32>
    %102 = arith.divf %100, %101 : vector<8x32xf32>
    %103 = vector.extract_strided_slice %89 {offsets = [0, 32], sizes = [8, 32], strides = [1, 1]} : vector<8x96xf32> to vector<8x32xf32>
    %104 = vector.extract_strided_slice %94 {offsets = [0, 32], sizes = [8, 32], strides = [1, 1]} : vector<8x96xf32> to vector<8x32xf32>
    %105 = arith.addf %103, %104 : vector<8x32xf32>
    %106 = arith.negf %105 : vector<8x32xf32>
    %107 = math.exp %106 : vector<8x32xf32>
    %cst_39 = arith.constant 1.000000e+00 : f32
    %108 = vector.broadcast %cst_39 : f32 to vector<8x32xf32>
    %109 = arith.addf %108, %107 : vector<8x32xf32>
    %110 = arith.divf %108, %109 : vector<8x32xf32>
    %111 = vector.extract_strided_slice %89 {offsets = [0, 64], sizes = [8, 32], strides = [1, 1]} : vector<8x96xf32> to vector<8x32xf32>
    %112 = vector.extract_strided_slice %94 {offsets = [0, 64], sizes = [8, 32], strides = [1, 1]} : vector<8x96xf32> to vector<8x32xf32>
    %113 = arith.mulf %102, %112 : vector<8x32xf32>
    %114 = arith.addf %111, %113 : vector<8x32xf32>
    %115 = math.tanh %114 : vector<8x32xf32>
    %cst_40 = arith.constant 1.000000e+00 : f32
    %116 = vector.broadcast %cst_40 : f32 to vector<8x32xf32>
    %117 = arith.subf %116, %110 : vector<8x32xf32>
    %118 = arith.mulf %117, %115 : vector<8x32xf32>
    %119 = arith.mulf %110, %81 : vector<8x32xf32>
    %120 = arith.addf %118, %119 : vector<8x32xf32>
    %121 = arith.index_cast %c2_i32 : i32 to index
    %c0_41 = arith.constant 0 : index
    %c0_42 = arith.constant 0 : index
    %122 = vector.load %arg11[%121, %c0_41, %c0_42] : memref<8x8x32xf32, #tpu.memory_space<vmem>>, vector<1x8x32xf32>
    %123 = vector.shape_cast %122 : vector<1x8x32xf32> to vector<8x32xf32>
    %124 = vector.shape_cast %120 : vector<8x32xf32> to vector<1x8x32xf32>
    tpu.vector_store %arg11[%121, %c0_41, %c0_42], %124 {strides = array<i32>} : memref<8x8x32xf32, #tpu.memory_space<vmem>>, vector<1x8x32xf32>,
    %c3_i32 = arith.constant 3 : i32
    %c8_i32_43 = arith.constant 8 : i32
    %125 = arith.muli %c3_i32, %c8_i32_43 : i32
    %126 = tpu.assume_multiple %125, 8 : i32
    %127 = arith.index_cast %126 : i32 to index
    %c0_44 = arith.constant 0 : index
    %128 = vector.load %arg10[%127, %c0_44] : memref<64x96xf32, #tpu.memory_space<vmem>>, vector<8x96xf32>
    %c0_45 = arith.constant 0 : index
    %c0_46 = arith.constant 0 : index
    %129 = vector.load %arg3[%c0_45, %c0_46] : memref<32x96xf32, #tpu.memory_space<vmem>>, vector<32x96xf32>
    %cst_47 = arith.constant dense<0.000000e+00> : vector<8x96xf32>
    %130 = tpu.matmul %120, %129, %cst_47 {dimension_numbers = #tpu.dot_dimension_numbers<[1], [0], [0], [1], [0, 0, 1, 1], [], []>} : vector<8x32xf32>, vector<32x96xf32>, vector<8x96xf32> -> vector<8x96xf32>
    %c0_48 = arith.constant 0 : index
    %c0_49 = arith.constant 0 : index
    %131 = vector.load %arg5[%c0_48, %c0_49] : memref<1x96xf32, #tpu.memory_space<vmem>>, vector<1x96xf32>
    %132 = vector.broadcast %131 : vector<1x96xf32> to vector<8x96xf32>
    %133 = arith.addf %130, %132 : vector<8x96xf32>
    %134 = vector.extract_strided_slice %128 {offsets = [0, 0], sizes = [8, 32], strides = [1, 1]} : vector<8x96xf32> to vector<8x32xf32>
    %135 = vector.extract_strided_slice %133 {offsets = [0, 0], sizes = [8, 32], strides = [1, 1]} : vector<8x96xf32> to vector<8x32xf32>
    %136 = arith.addf %134, %135 : vector<8x32xf32>
    %137 = arith.negf %136 : vector<8x32xf32>
    %138 = math.exp %137 : vector<8x32xf32>
    %cst_50 = arith.constant 1.000000e+00 : f32
    %139 = vector.broadcast %cst_50 : f32 to vector<8x32xf32>
    %140 = arith.addf %139, %138 : vector<8x32xf32>
    %141 = arith.divf %139, %140 : vector<8x32xf32>
    %142 = vector.extract_strided_slice %128 {offsets = [0, 32], sizes = [8, 32], strides = [1, 1]} : vector<8x96xf32> to vector<8x32xf32>
    %143 = vector.extract_strided_slice %133 {offsets = [0, 32], sizes = [8, 32], strides = [1, 1]} : vector<8x96xf32> to vector<8x32xf32>
    %144 = arith.addf %142, %143 : vector<8x32xf32>
    %145 = arith.negf %144 : vector<8x32xf32>
    %146 = math.exp %145 : vector<8x32xf32>
    %cst_51 = arith.constant 1.000000e+00 : f32
    %147 = vector.broadcast %cst_51 : f32 to vector<8x32xf32>
    %148 = arith.addf %147, %146 : vector<8x32xf32>
    %149 = arith.divf %147, %148 : vector<8x32xf32>
    %150 = vector.extract_strided_slice %128 {offsets = [0, 64], sizes = [8, 32], strides = [1, 1]} : vector<8x96xf32> to vector<8x32xf32>
    %151 = vector.extract_strided_slice %133 {offsets = [0, 64], sizes = [8, 32], strides = [1, 1]} : vector<8x96xf32> to vector<8x32xf32>
    %152 = arith.mulf %141, %151 : vector<8x32xf32>
    %153 = arith.addf %150, %152 : vector<8x32xf32>
    %154 = math.tanh %153 : vector<8x32xf32>
    %cst_52 = arith.constant 1.000000e+00 : f32
    %155 = vector.broadcast %cst_52 : f32 to vector<8x32xf32>
    %156 = arith.subf %155, %149 : vector<8x32xf32>
    %157 = arith.mulf %156, %154 : vector<8x32xf32>
    %158 = arith.mulf %149, %120 : vector<8x32xf32>
    %159 = arith.addf %157, %158 : vector<8x32xf32>
    %160 = arith.index_cast %c3_i32 : i32 to index
    %c0_53 = arith.constant 0 : index
    %c0_54 = arith.constant 0 : index
    %161 = vector.load %arg11[%160, %c0_53, %c0_54] : memref<8x8x32xf32, #tpu.memory_space<vmem>>, vector<1x8x32xf32>
    %162 = vector.shape_cast %161 : vector<1x8x32xf32> to vector<8x32xf32>
    %163 = vector.shape_cast %159 : vector<8x32xf32> to vector<1x8x32xf32>
    tpu.vector_store %arg11[%160, %c0_53, %c0_54], %163 {strides = array<i32>} : memref<8x8x32xf32, #tpu.memory_space<vmem>>, vector<1x8x32xf32>,
    %c4_i32 = arith.constant 4 : i32
    %c8_i32_55 = arith.constant 8 : i32
    %164 = arith.muli %c4_i32, %c8_i32_55 : i32
    %165 = tpu.assume_multiple %164, 8 : i32
    %166 = arith.index_cast %165 : i32 to index
    %c0_56 = arith.constant 0 : index
    %167 = vector.load %arg10[%166, %c0_56] : memref<64x96xf32, #tpu.memory_space<vmem>>, vector<8x96xf32>
    %c0_57 = arith.constant 0 : index
    %c0_58 = arith.constant 0 : index
    %168 = vector.load %arg3[%c0_57, %c0_58] : memref<32x96xf32, #tpu.memory_space<vmem>>, vector<32x96xf32>
    %cst_59 = arith.constant dense<0.000000e+00> : vector<8x96xf32>
    %169 = tpu.matmul %159, %168, %cst_59 {dimension_numbers = #tpu.dot_dimension_numbers<[1], [0], [0], [1], [0, 0, 1, 1], [], []>} : vector<8x32xf32>, vector<32x96xf32>, vector<8x96xf32> -> vector<8x96xf32>
    %c0_60 = arith.constant 0 : index
    %c0_61 = arith.constant 0 : index
    %170 = vector.load %arg5[%c0_60, %c0_61] : memref<1x96xf32, #tpu.memory_space<vmem>>, vector<1x96xf32>
    %171 = vector.broadcast %170 : vector<1x96xf32> to vector<8x96xf32>
    %172 = arith.addf %169, %171 : vector<8x96xf32>
    %173 = vector.extract_strided_slice %167 {offsets = [0, 0], sizes = [8, 32], strides = [1, 1]} : vector<8x96xf32> to vector<8x32xf32>
    %174 = vector.extract_strided_slice %172 {offsets = [0, 0], sizes = [8, 32], strides = [1, 1]} : vector<8x96xf32> to vector<8x32xf32>
    %175 = arith.addf %173, %174 : vector<8x32xf32>
    %176 = arith.negf %175 : vector<8x32xf32>
    %177 = math.exp %176 : vector<8x32xf32>
    %cst_62 = arith.constant 1.000000e+00 : f32
    %178 = vector.broadcast %cst_62 : f32 to vector<8x32xf32>
    %179 = arith.addf %178, %177 : vector<8x32xf32>
    %180 = arith.divf %178, %179 : vector<8x32xf32>
    %181 = vector.extract_strided_slice %167 {offsets = [0, 32], sizes = [8, 32], strides = [1, 1]} : vector<8x96xf32> to vector<8x32xf32>
    %182 = vector.extract_strided_slice %172 {offsets = [0, 32], sizes = [8, 32], strides = [1, 1]} : vector<8x96xf32> to vector<8x32xf32>
    %183 = arith.addf %181, %182 : vector<8x32xf32>
    %184 = arith.negf %183 : vector<8x32xf32>
    %185 = math.exp %184 : vector<8x32xf32>
    %cst_63 = arith.constant 1.000000e+00 : f32
    %186 = vector.broadcast %cst_63 : f32 to vector<8x32xf32>
    %187 = arith.addf %186, %185 : vector<8x32xf32>
    %188 = arith.divf %186, %187 : vector<8x32xf32>
    %189 = vector.extract_strided_slice %167 {offsets = [0, 64], sizes = [8, 32], strides = [1, 1]} : vector<8x96xf32> to vector<8x32xf32>
    %190 = vector.extract_strided_slice %172 {offsets = [0, 64], sizes = [8, 32], strides = [1, 1]} : vector<8x96xf32> to vector<8x32xf32>
    %191 = arith.mulf %180, %190 : vector<8x32xf32>
    %192 = arith.addf %189, %191 : vector<8x32xf32>
    %193 = math.tanh %192 : vector<8x32xf32>
    %cst_64 = arith.constant 1.000000e+00 : f32
    %194 = vector.broadcast %cst_64 : f32 to vector<8x32xf32>
    %195 = arith.subf %194, %188 : vector<8x32xf32>
    %196 = arith.mulf %195, %193 : vector<8x32xf32>
    %197 = arith.mulf %188, %159 : vector<8x32xf32>
    %198 = arith.addf %196, %197 : vector<8x32xf32>
    %199 = arith.index_cast %c4_i32 : i32 to index
    %c0_65 = arith.constant 0 : index
    %c0_66 = arith.constant 0 : index
    %200 = vector.load %arg11[%199, %c0_65, %c0_66] : memref<8x8x32xf32, #tpu.memory_space<vmem>>, vector<1x8x32xf32>
    %201 = vector.shape_cast %200 : vector<1x8x32xf32> to vector<8x32xf32>
    %202 = vector.shape_cast %198 : vector<8x32xf32> to vector<1x8x32xf32>
    tpu.vector_store %arg11[%199, %c0_65, %c0_66], %202 {strides = array<i32>} : memref<8x8x32xf32, #tpu.memory_space<vmem>>, vector<1x8x32xf32>,
    %c5_i32 = arith.constant 5 : i32
    %c8_i32_67 = arith.constant 8 : i32
    %203 = arith.muli %c5_i32, %c8_i32_67 : i32
    %204 = tpu.assume_multiple %203, 8 : i32
    %205 = arith.index_cast %204 : i32 to index
    %c0_68 = arith.constant 0 : index
    %206 = vector.load %arg10[%205, %c0_68] : memref<64x96xf32, #tpu.memory_space<vmem>>, vector<8x96xf32>
    %c0_69 = arith.constant 0 : index
    %c0_70 = arith.constant 0 : index
    %207 = vector.load %arg3[%c0_69, %c0_70] : memref<32x96xf32, #tpu.memory_space<vmem>>, vector<32x96xf32>
    %cst_71 = arith.constant dense<0.000000e+00> : vector<8x96xf32>
    %208 = tpu.matmul %198, %207, %cst_71 {dimension_numbers = #tpu.dot_dimension_numbers<[1], [0], [0], [1], [0, 0, 1, 1], [], []>} : vector<8x32xf32>, vector<32x96xf32>, vector<8x96xf32> -> vector<8x96xf32>
    %c0_72 = arith.constant 0 : index
    %c0_73 = arith.constant 0 : index
    %209 = vector.load %arg5[%c0_72, %c0_73] : memref<1x96xf32, #tpu.memory_space<vmem>>, vector<1x96xf32>
    %210 = vector.broadcast %209 : vector<1x96xf32> to vector<8x96xf32>
    %211 = arith.addf %208, %210 : vector<8x96xf32>
    %212 = vector.extract_strided_slice %206 {offsets = [0, 0], sizes = [8, 32], strides = [1, 1]} : vector<8x96xf32> to vector<8x32xf32>
    %213 = vector.extract_strided_slice %211 {offsets = [0, 0], sizes = [8, 32], strides = [1, 1]} : vector<8x96xf32> to vector<8x32xf32>
    %214 = arith.addf %212, %213 : vector<8x32xf32>
    %215 = arith.negf %214 : vector<8x32xf32>
    %216 = math.exp %215 : vector<8x32xf32>
    %cst_74 = arith.constant 1.000000e+00 : f32
    %217 = vector.broadcast %cst_74 : f32 to vector<8x32xf32>
    %218 = arith.addf %217, %216 : vector<8x32xf32>
    %219 = arith.divf %217, %218 : vector<8x32xf32>
    %220 = vector.extract_strided_slice %206 {offsets = [0, 32], sizes = [8, 32], strides = [1, 1]} : vector<8x96xf32> to vector<8x32xf32>
    %221 = vector.extract_strided_slice %211 {offsets = [0, 32], sizes = [8, 32], strides = [1, 1]} : vector<8x96xf32> to vector<8x32xf32>
    %222 = arith.addf %220, %221 : vector<8x32xf32>
    %223 = arith.negf %222 : vector<8x32xf32>
    %224 = math.exp %223 : vector<8x32xf32>
    %cst_75 = arith.constant 1.000000e+00 : f32
    %225 = vector.broadcast %cst_75 : f32 to vector<8x32xf32>
    %226 = arith.addf %225, %224 : vector<8x32xf32>
    %227 = arith.divf %225, %226 : vector<8x32xf32>
    %228 = vector.extract_strided_slice %206 {offsets = [0, 64], sizes = [8, 32], strides = [1, 1]} : vector<8x96xf32> to vector<8x32xf32>
    %229 = vector.extract_strided_slice %211 {offsets = [0, 64], sizes = [8, 32], strides = [1, 1]} : vector<8x96xf32> to vector<8x32xf32>
    %230 = arith.mulf %219, %229 : vector<8x32xf32>
    %231 = arith.addf %228, %230 : vector<8x32xf32>
    %232 = math.tanh %231 : vector<8x32xf32>
    %cst_76 = arith.constant 1.000000e+00 : f32
    %233 = vector.broadcast %cst_76 : f32 to vector<8x32xf32>
    %234 = arith.subf %233, %227 : vector<8x32xf32>
    %235 = arith.mulf %234, %232 : vector<8x32xf32>
    %236 = arith.mulf %227, %198 : vector<8x32xf32>
    %237 = arith.addf %235, %236 : vector<8x32xf32>
    %238 = arith.index_cast %c5_i32 : i32 to index
    %c0_77 = arith.constant 0 : index
    %c0_78 = arith.constant 0 : index
    %239 = vector.load %arg11[%238, %c0_77, %c0_78] : memref<8x8x32xf32, #tpu.memory_space<vmem>>, vector<1x8x32xf32>
    %240 = vector.shape_cast %239 : vector<1x8x32xf32> to vector<8x32xf32>
    %241 = vector.shape_cast %237 : vector<8x32xf32> to vector<1x8x32xf32>
    tpu.vector_store %arg11[%238, %c0_77, %c0_78], %241 {strides = array<i32>} : memref<8x8x32xf32, #tpu.memory_space<vmem>>, vector<1x8x32xf32>,
    %c6_i32 = arith.constant 6 : i32
    %c8_i32_79 = arith.constant 8 : i32
    %242 = arith.muli %c6_i32, %c8_i32_79 : i32
    %243 = tpu.assume_multiple %242, 8 : i32
    %244 = arith.index_cast %243 : i32 to index
    %c0_80 = arith.constant 0 : index
    %245 = vector.load %arg10[%244, %c0_80] : memref<64x96xf32, #tpu.memory_space<vmem>>, vector<8x96xf32>
    %c0_81 = arith.constant 0 : index
    %c0_82 = arith.constant 0 : index
    %246 = vector.load %arg3[%c0_81, %c0_82] : memref<32x96xf32, #tpu.memory_space<vmem>>, vector<32x96xf32>
    %cst_83 = arith.constant dense<0.000000e+00> : vector<8x96xf32>
    %247 = tpu.matmul %237, %246, %cst_83 {dimension_numbers = #tpu.dot_dimension_numbers<[1], [0], [0], [1], [0, 0, 1, 1], [], []>} : vector<8x32xf32>, vector<32x96xf32>, vector<8x96xf32> -> vector<8x96xf32>
    %c0_84 = arith.constant 0 : index
    %c0_85 = arith.constant 0 : index
    %248 = vector.load %arg5[%c0_84, %c0_85] : memref<1x96xf32, #tpu.memory_space<vmem>>, vector<1x96xf32>
    %249 = vector.broadcast %248 : vector<1x96xf32> to vector<8x96xf32>
    %250 = arith.addf %247, %249 : vector<8x96xf32>
    %251 = vector.extract_strided_slice %245 {offsets = [0, 0], sizes = [8, 32], strides = [1, 1]} : vector<8x96xf32> to vector<8x32xf32>
    %252 = vector.extract_strided_slice %250 {offsets = [0, 0], sizes = [8, 32], strides = [1, 1]} : vector<8x96xf32> to vector<8x32xf32>
    %253 = arith.addf %251, %252 : vector<8x32xf32>
    %254 = arith.negf %253 : vector<8x32xf32>
    %255 = math.exp %254 : vector<8x32xf32>
    %cst_86 = arith.constant 1.000000e+00 : f32
    %256 = vector.broadcast %cst_86 : f32 to vector<8x32xf32>
    %257 = arith.addf %256, %255 : vector<8x32xf32>
    %258 = arith.divf %256, %257 : vector<8x32xf32>
    %259 = vector.extract_strided_slice %245 {offsets = [0, 32], sizes = [8, 32], strides = [1, 1]} : vector<8x96xf32> to vector<8x32xf32>
    %260 = vector.extract_strided_slice %250 {offsets = [0, 32], sizes = [8, 32], strides = [1, 1]} : vector<8x96xf32> to vector<8x32xf32>
    %261 = arith.addf %259, %260 : vector<8x32xf32>
    %262 = arith.negf %261 : vector<8x32xf32>
    %263 = math.exp %262 : vector<8x32xf32>
    %cst_87 = arith.constant 1.000000e+00 : f32
    %264 = vector.broadcast %cst_87 : f32 to vector<8x32xf32>
    %265 = arith.addf %264, %263 : vector<8x32xf32>
    %266 = arith.divf %264, %265 : vector<8x32xf32>
    %267 = vector.extract_strided_slice %245 {offsets = [0, 64], sizes = [8, 32], strides = [1, 1]} : vector<8x96xf32> to vector<8x32xf32>
    %268 = vector.extract_strided_slice %250 {offsets = [0, 64], sizes = [8, 32], strides = [1, 1]} : vector<8x96xf32> to vector<8x32xf32>
    %269 = arith.mulf %258, %268 : vector<8x32xf32>
    %270 = arith.addf %267, %269 : vector<8x32xf32>
    %271 = math.tanh %270 : vector<8x32xf32>
    %cst_88 = arith.constant 1.000000e+00 : f32
    %272 = vector.broadcast %cst_88 : f32 to vector<8x32xf32>
    %273 = arith.subf %272, %266 : vector<8x32xf32>
    %274 = arith.mulf %273, %271 : vector<8x32xf32>
    %275 = arith.mulf %266, %237 : vector<8x32xf32>
    %276 = arith.addf %274, %275 : vector<8x32xf32>
    %277 = arith.index_cast %c6_i32 : i32 to index
    %c0_89 = arith.constant 0 : index
    %c0_90 = arith.constant 0 : index
    %278 = vector.load %arg11[%277, %c0_89, %c0_90] : memref<8x8x32xf32, #tpu.memory_space<vmem>>, vector<1x8x32xf32>
    %279 = vector.shape_cast %278 : vector<1x8x32xf32> to vector<8x32xf32>
    %280 = vector.shape_cast %276 : vector<8x32xf32> to vector<1x8x32xf32>
    tpu.vector_store %arg11[%277, %c0_89, %c0_90], %280 {strides = array<i32>} : memref<8x8x32xf32, #tpu.memory_space<vmem>>, vector<1x8x32xf32>,
    %c7_i32 = arith.constant 7 : i32
    %c8_i32_91 = arith.constant 8 : i32
    %281 = arith.muli %c7_i32, %c8_i32_91 : i32
    %282 = tpu.assume_multiple %281, 8 : i32
    %283 = arith.index_cast %282 : i32 to index
    %c0_92 = arith.constant 0 : index
    %284 = vector.load %arg10[%283, %c0_92] : memref<64x96xf32, #tpu.memory_space<vmem>>, vector<8x96xf32>
    %c0_93 = arith.constant 0 : index
    %c0_94 = arith.constant 0 : index
    %285 = vector.load %arg3[%c0_93, %c0_94] : memref<32x96xf32, #tpu.memory_space<vmem>>, vector<32x96xf32>
    %cst_95 = arith.constant dense<0.000000e+00> : vector<8x96xf32>
    %286 = tpu.matmul %276, %285, %cst_95 {dimension_numbers = #tpu.dot_dimension_numbers<[1], [0], [0], [1], [0, 0, 1, 1], [], []>} : vector<8x32xf32>, vector<32x96xf32>, vector<8x96xf32> -> vector<8x96xf32>
    %c0_96 = arith.constant 0 : index
    %c0_97 = arith.constant 0 : index
    %287 = vector.load %arg5[%c0_96, %c0_97] : memref<1x96xf32, #tpu.memory_space<vmem>>, vector<1x96xf32>
    %288 = vector.broadcast %287 : vector<1x96xf32> to vector<8x96xf32>
    %289 = arith.addf %286, %288 : vector<8x96xf32>
    %290 = vector.extract_strided_slice %284 {offsets = [0, 0], sizes = [8, 32], strides = [1, 1]} : vector<8x96xf32> to vector<8x32xf32>
    %291 = vector.extract_strided_slice %289 {offsets = [0, 0], sizes = [8, 32], strides = [1, 1]} : vector<8x96xf32> to vector<8x32xf32>
    %292 = arith.addf %290, %291 : vector<8x32xf32>
    %293 = arith.negf %292 : vector<8x32xf32>
    %294 = math.exp %293 : vector<8x32xf32>
    %cst_98 = arith.constant 1.000000e+00 : f32
    %295 = vector.broadcast %cst_98 : f32 to vector<8x32xf32>
    %296 = arith.addf %295, %294 : vector<8x32xf32>
    %297 = arith.divf %295, %296 : vector<8x32xf32>
    %298 = vector.extract_strided_slice %284 {offsets = [0, 32], sizes = [8, 32], strides = [1, 1]} : vector<8x96xf32> to vector<8x32xf32>
    %299 = vector.extract_strided_slice %289 {offsets = [0, 32], sizes = [8, 32], strides = [1, 1]} : vector<8x96xf32> to vector<8x32xf32>
    %300 = arith.addf %298, %299 : vector<8x32xf32>
    %301 = arith.negf %300 : vector<8x32xf32>
    %302 = math.exp %301 : vector<8x32xf32>
    %cst_99 = arith.constant 1.000000e+00 : f32
    %303 = vector.broadcast %cst_99 : f32 to vector<8x32xf32>
    %304 = arith.addf %303, %302 : vector<8x32xf32>
    %305 = arith.divf %303, %304 : vector<8x32xf32>
    %306 = vector.extract_strided_slice %284 {offsets = [0, 64], sizes = [8, 32], strides = [1, 1]} : vector<8x96xf32> to vector<8x32xf32>
    %307 = vector.extract_strided_slice %289 {offsets = [0, 64], sizes = [8, 32], strides = [1, 1]} : vector<8x96xf32> to vector<8x32xf32>
    %308 = arith.mulf %297, %307 : vector<8x32xf32>
    %309 = arith.addf %306, %308 : vector<8x32xf32>
    %310 = math.tanh %309 : vector<8x32xf32>
    %cst_100 = arith.constant 1.000000e+00 : f32
    %311 = vector.broadcast %cst_100 : f32 to vector<8x32xf32>
    %312 = arith.subf %311, %305 : vector<8x32xf32>
    %313 = arith.mulf %312, %310 : vector<8x32xf32>
    %314 = arith.mulf %305, %276 : vector<8x32xf32>
    %315 = arith.addf %313, %314 : vector<8x32xf32>
    %316 = arith.index_cast %c7_i32 : i32 to index
    %c0_101 = arith.constant 0 : index
    %c0_102 = arith.constant 0 : index
    %317 = vector.load %arg11[%316, %c0_101, %c0_102] : memref<8x8x32xf32, #tpu.memory_space<vmem>>, vector<1x8x32xf32>
    %318 = vector.shape_cast %317 : vector<1x8x32xf32> to vector<8x32xf32>
    %319 = vector.shape_cast %315 : vector<8x32xf32> to vector<1x8x32xf32>
    tpu.vector_store %arg11[%316, %c0_101, %c0_102], %319 {strides = array<i32>} : memref<8x8x32xf32, #tpu.memory_space<vmem>>, vector<1x8x32xf32>,
    %c8_i32_103 = arith.constant 8 : i32
    %320 = tpu.iota {dimensions = array<i32: 0>} : vector<8x8x1xi32>
    %c0_104 = arith.constant 0 : index
    %c0_105 = arith.constant 0 : index
    %c0_106 = arith.constant 0 : index
    %321 = vector.load %arg6[%c0_104, %c0_105, %c0_106] : memref<1x8x1xi32, #tpu.memory_space<vmem>>, vector<1x8x1xi32>
    %322 = vector.broadcast %321 : vector<1x8x1xi32> to vector<8x8x1xi32>
    %323 = arith.cmpi slt, %320, %322 : vector<8x8x1xi32>
    %c0_107 = arith.constant 0 : index
    %c0_108 = arith.constant 0 : index
    %c0_109 = arith.constant 0 : index
    %324 = vector.load %arg11[%c0_107, %c0_108, %c0_109] : memref<8x8x32xf32, #tpu.memory_space<vmem>>, vector<8x8x32xf32>
    %cst_110 = arith.constant 0.000000e+00 : f32
    %325 = vector.shape_cast %323 : vector<8x8x1xi1> to vector<8x8x1xi1>
    %326 = vector.broadcast %325 : vector<8x8x1xi1> to vector<8x8x32xi1>
    %327 = vector.broadcast %cst_110 : f32 to vector<8x8x32xf32>
    %328 = arith.select %326, %324, %327 : vector<8x8x32xi1>, vector<8x8x32xf32>
    %c0_111 = arith.constant 0 : index
    %c0_112 = arith.constant 0 : index
    %c0_113 = arith.constant 0 : index
    %329 = vector.load %arg7[%c0_111, %c0_112, %c0_113] : memref<8x1x1xf32, #tpu.memory_space<vmem>>, vector<8x1x1xf32>
    %330 = vector.broadcast %329 : vector<8x1x1xf32> to vector<8x8x32xf32>
    %331 = arith.mulf %328, %330 : vector<8x8x32xf32>
    %cst_114 = arith.constant dense<0.000000e+00> : vector<8x32xf32>
    %332 = vector.multi_reduction <add>, %331, %cst_114 [0] : vector<8x8x32xf32> to vector<8x32xf32>
    %c0_115 = arith.constant 0 : index
    %c0_116 = arith.constant 0 : index
    %333 = vector.load %arg8[%c0_115, %c0_116] : memref<1x1xf32, #tpu.memory_space<vmem>>, vector<1x1xf32>
    %334 = vector.broadcast %333 : vector<1x1xf32> to vector<8x32xf32>
    %335 = arith.addf %332, %334 : vector<8x32xf32>
    %c0_117 = arith.constant 0 : index
    %c0_118 = arith.constant 0 : index
    %336 = vector.load %arg9[%c0_117, %c0_118] : memref<8x32xf32, #tpu.memory_space<vmem>>, vector<8x32xf32>
    tpu.vector_store %arg9[%c0_117, %c0_118], %335 {strides = array<i32>} : memref<8x32xf32, #tpu.memory_space<vmem>>, vector<8x32xf32>,
    return
  }
  func.func @transform_0(%arg0: i32) -> (i32, i32) {
    %c0_i32 = arith.constant 0 : i32
    %c0_i32_0 = arith.constant 0 : i32
    %c0_i32_1 = arith.constant 0 : i32
    return %c0_i32, %c0_i32_0 : i32, i32
  }
  func.func @transform_1(%arg0: i32) -> (i32, i32) {
    %c0_i32 = arith.constant 0 : i32
    %c0_i32_0 = arith.constant 0 : i32
    %c0_i32_1 = arith.constant 0 : i32
    return %c0_i32, %c0_i32_0 : i32, i32
  }
  func.func @transform_2(%arg0: i32) -> (i32, i32) {
    %c0_i32 = arith.constant 0 : i32
    %c0_i32_0 = arith.constant 0 : i32
    %c0_i32_1 = arith.constant 0 : i32
    return %c0_i32, %c0_i32_0 : i32, i32
  }
  func.func @transform_3(%arg0: i32) -> (i32, i32) {
    %c0_i32 = arith.constant 0 : i32
    %c0_i32_0 = arith.constant 0 : i32
    %c0_i32_1 = arith.constant 0 : i32
    return %c0_i32, %c0_i32_0 : i32, i32
  }
  func.func @transform_4(%arg0: i32) -> (i32, i32) {
    %c0_i32 = arith.constant 0 : i32
    %c0_i32_0 = arith.constant 0 : i32
    %c0_i32_1 = arith.constant 0 : i32
    return %c0_i32, %c0_i32_0 : i32, i32
  }
  func.func @transform_5(%arg0: i32) -> (i32, i32, i32) {
    %c0_i32 = arith.constant 0 : i32
    %c0_i32_0 = arith.constant 0 : i32
    %c0_i32_1 = arith.constant 0 : i32
    %c0_i32_2 = arith.constant 0 : i32
    return %c0_i32, %c0_i32_0, %c0_i32_1 : i32, i32, i32
  }
  func.func @transform_6(%arg0: i32) -> (i32, i32, i32) {
    %c0_i32 = arith.constant 0 : i32
    %c0_i32_0 = arith.constant 0 : i32
    %c0_i32_1 = arith.constant 0 : i32
    %c0_i32_2 = arith.constant 0 : i32
    return %c0_i32, %c0_i32_0, %c0_i32_1 : i32, i32, i32
  }
  func.func @transform_7(%arg0: i32) -> (i32, i32) {
    %c0_i32 = arith.constant 0 : i32
    %c0_i32_0 = arith.constant 0 : i32
    %c0_i32_1 = arith.constant 0 : i32
    return %c0_i32, %c0_i32_0 : i32, i32
  }
  func.func @transform_8(%arg0: i32) -> (i32, i32) {
    %c0_i32 = arith.constant 0 : i32
    %c0_i32_0 = arith.constant 0 : i32
    %c0_i32_1 = arith.constant 0 : i32
    return %c0_i32, %c0_i32_0 : i32, i32
  }
}

module attributes {stable_mosaic.version = 11 : i64} {
  func.func @head_kernel(%arg0: i32, %arg1: memref<8x32xf32, #tpu.memory_space<vmem>>, %arg2: memref<1x32xf32, #tpu.memory_space<vmem>>, %arg3: memref<1x32xf32, #tpu.memory_space<vmem>>, %arg4: memref<32x8xf32, #tpu.memory_space<vmem>>, %arg5: memref<1x8xf32, #tpu.memory_space<vmem>>, %arg6: memref<8x8xf32, #tpu.memory_space<vmem>>) attributes {dimension_semantics = [#tpu.dimension_semantics<arbitrary>], iteration_bounds = array<i64: 1>, scalar_prefetch = 0 : i64, scratch_operands = 0 : i64, tpu.core_type = #tpu.core_type<tc>, window_params = [{pipeline_mode = #tpu.pipeline_mode<synchronous>, transform_indices = @transform_0, window_bounds = array<i64: 8, 32>}, {pipeline_mode = #tpu.pipeline_mode<synchronous>, transform_indices = @transform_1, window_bounds = array<i64: 1, 32>}, {pipeline_mode = #tpu.pipeline_mode<synchronous>, transform_indices = @transform_2, window_bounds = array<i64: 1, 32>}, {pipeline_mode = #tpu.pipeline_mode<synchronous>, transform_indices = @transform_3, window_bounds = array<i64: 32, 8>}, {pipeline_mode = #tpu.pipeline_mode<synchronous>, transform_indices = @transform_4, window_bounds = array<i64: 1, 8>}, {pipeline_mode = #tpu.pipeline_mode<synchronous>, transform_indices = @transform_5, window_bounds = array<i64: 8, 8>}]} {
    %c0 = arith.constant 0 : index
    %c0_0 = arith.constant 0 : index
    %0 = vector.load %arg1[%c0, %c0_0] : memref<8x32xf32, #tpu.memory_space<vmem>>, vector<8x32xf32>
    %cst = arith.constant dense<0.000000e+00> : vector<32xf32>
    %1 = vector.multi_reduction <add>, %0, %cst [0] : vector<8x32xf32> to vector<32xf32>
    %2 = vector.shape_cast %1 : vector<32xf32> to vector<1x32xf32>
    %cst_1 = arith.constant 8.000000e+00 : f32
    %3 = vector.broadcast %cst_1 : f32 to vector<1x32xf32>
    %4 = arith.divf %2, %3 : vector<1x32xf32>
    %5 = vector.broadcast %4 : vector<1x32xf32> to vector<8x32xf32>
    %6 = arith.subf %0, %5 : vector<8x32xf32>
    %7 = arith.mulf %6, %6 : vector<8x32xf32>
    %cst_2 = arith.constant dense<0.000000e+00> : vector<32xf32>
    %8 = vector.multi_reduction <add>, %7, %cst_2 [0] : vector<8x32xf32> to vector<32xf32>
    %9 = vector.shape_cast %8 : vector<32xf32> to vector<1x32xf32>
    %cst_3 = arith.constant 8.000000e+00 : f32
    %10 = vector.broadcast %cst_3 : f32 to vector<1x32xf32>
    %11 = arith.divf %9, %10 : vector<1x32xf32>
    %12 = vector.broadcast %4 : vector<1x32xf32> to vector<8x32xf32>
    %13 = arith.subf %0, %12 : vector<8x32xf32>
    %cst_4 = arith.constant 9.99999974E-6 : f32
    %14 = vector.broadcast %cst_4 : f32 to vector<1x32xf32>
    %15 = arith.addf %11, %14 : vector<1x32xf32>
    %16 = math.rsqrt %15 : vector<1x32xf32>
    %17 = vector.broadcast %16 : vector<1x32xf32> to vector<8x32xf32>
    %18 = arith.mulf %13, %17 : vector<8x32xf32>
    %c0_5 = arith.constant 0 : index
    %c0_6 = arith.constant 0 : index
    %19 = vector.load %arg2[%c0_5, %c0_6] : memref<1x32xf32, #tpu.memory_space<vmem>>, vector<1x32xf32>
    %20 = vector.broadcast %19 : vector<1x32xf32> to vector<8x32xf32>
    %21 = arith.mulf %18, %20 : vector<8x32xf32>
    %c0_7 = arith.constant 0 : index
    %c0_8 = arith.constant 0 : index
    %22 = vector.load %arg3[%c0_7, %c0_8] : memref<1x32xf32, #tpu.memory_space<vmem>>, vector<1x32xf32>
    %23 = vector.broadcast %22 : vector<1x32xf32> to vector<8x32xf32>
    %24 = arith.addf %21, %23 : vector<8x32xf32>
    %c0_9 = arith.constant 0 : index
    %c0_10 = arith.constant 0 : index
    %25 = vector.load %arg4[%c0_9, %c0_10] : memref<32x8xf32, #tpu.memory_space<vmem>>, vector<32x8xf32>
    %cst_11 = arith.constant dense<0.000000e+00> : vector<8x8xf32>
    %26 = tpu.matmul %24, %25, %cst_11 {dimension_numbers = #tpu.dot_dimension_numbers<[1], [0], [0], [1], [0, 0, 1, 1], [], []>} : vector<8x32xf32>, vector<32x8xf32>, vector<8x8xf32> -> vector<8x8xf32>
    %c0_12 = arith.constant 0 : index
    %c0_13 = arith.constant 0 : index
    %27 = vector.load %arg5[%c0_12, %c0_13] : memref<1x8xf32, #tpu.memory_space<vmem>>, vector<1x8xf32>
    %28 = vector.broadcast %27 : vector<1x8xf32> to vector<8x8xf32>
    %29 = arith.addf %26, %28 : vector<8x8xf32>
    %cst_14 = arith.constant dense<0xFF800000> : vector<8xf32>
    %30 = vector.multi_reduction <maximumf>, %29, %cst_14 [1] : vector<8x8xf32> to vector<8xf32>
    %31 = vector.shape_cast %30 : vector<8xf32> to vector<8x1xf32>
    %32 = vector.broadcast %31 : vector<8x1xf32> to vector<8x8xf32>
    %33 = arith.subf %29, %32 : vector<8x8xf32>
    %34 = math.exp %33 : vector<8x8xf32>
    %cst_15 = arith.constant dense<0.000000e+00> : vector<8xf32>
    %35 = vector.multi_reduction <add>, %34, %cst_15 [1] : vector<8x8xf32> to vector<8xf32>
    %36 = vector.shape_cast %35 : vector<8xf32> to vector<8x1xf32>
    %37 = math.log %36 : vector<8x1xf32>
    %38 = arith.addf %31, %37 : vector<8x1xf32>
    %39 = vector.broadcast %38 : vector<8x1xf32> to vector<8x8xf32>
    %40 = arith.subf %29, %39 : vector<8x8xf32>
    %c0_16 = arith.constant 0 : index
    %c0_17 = arith.constant 0 : index
    %41 = vector.load %arg6[%c0_16, %c0_17] : memref<8x8xf32, #tpu.memory_space<vmem>>, vector<8x8xf32>
    tpu.vector_store %arg6[%c0_16, %c0_17], %40 {strides = array<i32>} : memref<8x8xf32, #tpu.memory_space<vmem>>, vector<8x8xf32>,
    return
  }
  func.func @transform_0(%arg0: i32) -> (i32, i32) {
    %c0_i32 = arith.constant 0 : i32
    %c0_i32_0 = arith.constant 0 : i32
    %c0_i32_1 = arith.constant 0 : i32
    return %c0_i32, %c0_i32_0 : i32, i32
  }
  func.func @transform_1(%arg0: i32) -> (i32, i32) {
    %c0_i32 = arith.constant 0 : i32
    %c0_i32_0 = arith.constant 0 : i32
    %c0_i32_1 = arith.constant 0 : i32
    return %c0_i32, %c0_i32_0 : i32, i32
  }
  func.func @transform_2(%arg0: i32) -> (i32, i32) {
    %c0_i32 = arith.constant 0 : i32
    %c0_i32_0 = arith.constant 0 : i32
    %c0_i32_1 = arith.constant 0 : i32
    return %c0_i32, %c0_i32_0 : i32, i32
  }
  func.func @transform_3(%arg0: i32) -> (i32, i32) {
    %c0_i32 = arith.constant 0 : i32
    %c0_i32_0 = arith.constant 0 : i32
    %c0_i32_1 = arith.constant 0 : i32
    return %c0_i32, %c0_i32_0 : i32, i32
  }
  func.func @transform_4(%arg0: i32) -> (i32, i32) {
    %c0_i32 = arith.constant 0 : i32
    %c0_i32_0 = arith.constant 0 : i32
    %c0_i32_1 = arith.constant 0 : i32
    return %c0_i32, %c0_i32_0 : i32, i32
  }
  func.func @transform_5(%arg0: i32) -> (i32, i32) {
    %c0_i32 = arith.constant 0 : i32
    %c0_i32_0 = arith.constant 0 : i32
    %c0_i32_1 = arith.constant 0 : i32
    return %c0_i32, %c0_i32_0 : i32, i32
  }
}

</mosaic_0001>

<bundles_post_ra>
// kernel: model4_forward.3
= control target key start
LH: loop header
LB: loop body
LE: loop exit
PB: predicated region body
PF: predicated region fallthrough
CT: control target
= control target key end

     0   :  { %vm22_vm0 = vcmask 261120   ;;  %v172_v3 = vmov 8.0   ;;  %s237_s0 = inlined_call_operand.vmem [shape: f32[8,32], index: 0, kind: input, shape index: {}]   ;;  %s238_s1 = inlined_call_operand.vmem [shape: f32[1,32], index: 1, kind: input, shape index: {}]   ;;  %s239_s2 = inlined_call_operand.vmem [shape: f32[1,32], index: 2, kind: input, shape index: {}]   ;;  %s240_s3 = inlined_call_operand.vmem [shape: f32[32,8], index: 3, kind: input, shape index: {}]   ;;  %s241_s4 = inlined_call_operand.vmem [shape: f32[1,8], index: 4, kind: input, shape index: {}]   ;;  %s242_s5 = inlined_call_operand.hbm [shape: f32[8,8], index: 5, kind: output, shape index: {}]  }
   0x1   :  { %v73_v0 = vld [vmem:[%s240_s3 + $0x18] sm:$0xff]  ;;  %v72_v1 = vld [vmem:[%s240_s3 + $0x10] sm:$0xff]  ;;  %v21_v2 = vld [vmem:[%s237_s0] sm:$0xff]  ;;  %138 = vrcp.f32 %v172_v3 }
   0x2   :  { %93 = vmatpush.msra.mxu0 %v73_v0  ;;  %v71_v4 = vld [vmem:[%s240_s3 + $0x8] sm:$0xff]  ;;  %v23_v5 = vsel %vm22_vm0, %v21_v2, 0.0 }
   0x3   :  { %v24_v6 = vrot.slane %v23_v5, 4 }
   0x4   :  { %94 = vmatpush.msra.mxu0 %v72_v1 }
   0x5   :  { %10 = vsyncpa [#allocation3], 0  ;;  %v70_v7 = vld [vmem:[%s240_s3] sm:$0xff]  ;;  %v25_v8 = vadd.f32 %v24_v6, %v23_v5  ;;  %vm101_vm5 = vcmask 64512   ;;  %s123_s8 = sshll.u32 %s242_s5, 4  ;;  %s124_s8 = int_to_ptr.hbm [resolvable:$true] %s123_s8 }
   0x6   :  { %95 = vmatpush.msra.mxu0 %v71_v4  ;;  %v135_v37 = vld [vmem:[%s238_s1] ss:$0 sm:$0xff]  ;;  %s173_s1 = smov [#allocation2]  }
   0x7   :  { %v139_v9 = vpop.eup %138  ;;  %v26_v10 = vrot.slane %v25_v8, 2  ;;  %v136_v40 = vld [vmem:[%s239_s2] ss:$0 sm:$0xff]  ;;  %s121_s2 = sshll.u32 %s173_s1, 4  ;;  %s122_s2 = int_to_ptr.vmem [resolvable:$true] %s121_s2 }
   0x8   :  { %96 = vmatpush.msra.mxu0 %v70_v7  ;;  %v31_v11 = vmul.f32 8.0, %v139_v9  ;;  %vm35_vm1 = vweird.f32 %v139_v9  ;;  %v137_v43 = vld [vmem:[%s241_s4] ss:$0 sm:$0xff] }
   0x9   :  { %v27_v12 = vadd.f32 %v26_v10, %v25_v8 }
   0xa   :  { %v32_v13 = vsub.f32 1.0, %v31_v11 }
   0xb   :  { %v28_v14 = vrot.slane %v27_v12, 1 }
   0xc   :  { %v33_v15 = vmul.f32 %v139_v9, %v32_v13 }
   0xd   :  { %v29_v16 = vadd.f32 %v28_v14, %v27_v12 }
   0xe   :  { %v34_v17 = vadd.f32 %v139_v9, %v33_v15 }
  0x10   :  { %v36_v18 = vsel %vm35_vm1, %v139_v9, %v34_v17 }
  0x11   :  { %v37_v19 = vmul.f32 %v36_v18, %v29_v16 }
  0x13   :  { %v38_v20 = vsub.f32 %v21_v2, %v37_v19 }
  0x15   :  { %v39_v21 = vmul.f32 %v38_v20, %v38_v20 }
  0x17   :  { %v40_v22 = vsel %vm22_vm0, %v39_v21, 0.0 }
  0x18   :  { %v41_v23 = vrot.slane %v40_v22, 4 }
  0x1a   :  { %v42_v24 = vadd.f32 %v41_v23, %v40_v22 }
  0x1c   :  { %v43_v25 = vrot.slane %v42_v24, 2 }
  0x1e   :  { %v44_v26 = vadd.f32 %v43_v25, %v42_v24 }
  0x20   :  { %v45_v27 = vrot.slane %v44_v26, 1 }
  0x22   :  { %v46_v28 = vadd.f32 %v45_v27, %v44_v26 }
  0x24   :  { %v47_v29 = vmul.f32 %v46_v28, %v36_v18 }
  0x26   :  { %v48_v30 = vadd.f32 1e-05, %v47_v29 }
  0x28   :  { %140 = vrsqrt.f32 %v48_v30  ;;  %vm55_vm2 = vweird.f32 %v48_v30 }
  0x2e   :  { %v141_v31 = vpop.eup %140 }
  0x2f   :  { %v50_v32 = vmul.f32 %v141_v31, %v48_v30  ;;  %vm56_vm3 = vweird.f32 %v141_v31 }
  0x30   :  { %vm57_vm4 = vmor %vm55_vm2, %vm56_vm3 }
  0x31   :  { %v51_v33 = vmul.f32 %v141_v31, %v50_v32 }
  0x33   :  { %v52_v34 = vmul.f32 0.5, %v51_v33 }
  0x35   :  { %v53_v35 = vsub.f32 1.5, %v52_v34 }
  0x37   :  { %v54_v36 = vmul.f32 %v141_v31, %v53_v35 }
  0x39   :  { %v58_v38 = vsel %vm57_vm4, %v141_v31, %v54_v36 }
  0x3a   :  { %v59_v39 = vmul.f32 %v58_v38, %v38_v20 }
  0x3c   :  { %v64_v41 = vmul.f32 %v135_v37, %v59_v39 }
  0x3e   :  { %v69_v42 = vadd.f32 %v136_v40, %v64_v41 }
  0x40   :  { %132 = vmatmul.msk.f32.vlgmr.msra.gmra.mxu0 %vm22_vm0, %v69_v42 }
  0xbd   :  { %v98_v44 = vpop.f32.mrf.mxu0 }
  0xbe   :  { %v99_v45 = vadd.f32 %v137_v43, %v98_v44 }
  0xc0   :  { %v102_v46 = vsel %vm101_vm5, %v99_v45, -inf }
  0xc1   :  { %103 = vmax.xlane.f32.xlu0 %v102_v46 }
 0x134   :  { %v104_v47 = vpop.xlane.xlu0 %103 }
 0x135   :  { %v105_v48 = vsub.f32 %v99_v45, %v104_v47 }
 0x137   :  { %v106_v49 = vmul.f32 1.442695, %v105_v48 }
 0x139   :  { %142 = vpow2.f32 %v106_v49 }
 0x13f   :  { %v143_v50 = vpop.eup %142 }
 0x140   :  { %v108_v51 = vsel %vm101_vm5, %v143_v50, 0.0 }
 0x141   :  { %109 = vadd.xlane.f32.xlu0 %v108_v51 }
 0x1b4   :  { %v110_v52 = vpop.xlane.xlu0 %109 }
 0x1b5   :  { %144 = vlog2.f32 %v110_v52 }
 0x1bb   :  { %v145_v53 = vpop.eup %144 }
 0x1bc   :  { %v112_v54 = vmul.f32 0.6931472, %v145_v53 }
 0x1be   :  { %v113_v55 = vadd.f32 %v112_v54, %v104_v47 }
 0x1c0   :  { %v114_v56 = vsub.f32 %v99_v45, %v113_v55 }
 0x1c2   :  { %115 = vst.msk [vmem:[#allocation2] sm:$0xff] %vm101_vm5, %v114_v56 }
 0x1c3   :  { %126 = dma.vmem_to_hbm [thread:$0]  %s122_s2, 128, %s124_s8, [#allocation3]  }
 0x1c4   :  { %170 = dma.done.wait [#allocation3], 128  }
 0x1c5   :  { %171 = vsyncadd [#allocation3], 4294967168 }
 0x1c6   :  { %131 = vsyncpa [#allocation3], 1 }

// kernel: model4_forward.2
= control target key start
LH: loop header
LB: loop body
LE: loop exit
PB: predicated region body
PF: predicated region fallthrough
CT: control target
= control target key end

     0   :  { %s1343_s0 = inlined_call_operand.hbm [shape: f32[64,16], index: 0, kind: input, shape index: {}]   ;;  %s1344_s1 = inlined_call_operand.vmem [shape: f32[16,96], index: 1, kind: input, shape index: {}]   ;;  %s1345_s2 = inlined_call_operand.hbm [shape: f32[32,96], index: 2, kind: input, shape index: {}]   ;;  %s1346_s3 = inlined_call_operand.vmem [shape: f32[1,96], index: 3, kind: input, shape index: {}]   ;;  %s1347_s4 = inlined_call_operand.vmem [shape: f32[1,96], index: 4, kind: input, shape index: {}]   ;;  %s1348_s5 = inlined_call_operand.vmem [shape: s32[1,8,1], index: 5, kind: input, shape index: {}]   ;;  %s1349_s6 = inlined_call_operand.vmem [shape: f32[8,1,1], index: 6, kind: input, shape index: {}]   ;;  %s1350_s7 = inlined_call_operand.<no memory space> [shape: f32[1,1], index: 7, kind: input, shape index: {}]   ;;  %s1351_s8 = inlined_call_operand.vmem [shape: f32[8,32], index: 8, kind: output, shape index: {}]  }
   0x1   :  { %v13_v0 = vstv %s1350_s7 }
   0x2   :  { %14 = vst [vmem:[#allocation4] sm:$0x1] %v13_v0 }
   0x3   :  { %15 = vsyncpa [#allocation6], 0  ;;  %s21_s9 = sshll.u32 %s1343_s0, 4  ;;  %s22_s9 = int_to_ptr.hbm [resolvable:$true] %s21_s9 }
   0x4   :  { %16 = vsyncpa [#allocation8], 0  ;;  %s1081_s10 = smov [#allocation5]   ;;  %s36_s14 = sshll.u32 %s1345_s2, 4  ;;  %s37_s14 = int_to_ptr.hbm [resolvable:$true] %s36_s14 }
   0x5   :  { %s23_s11 = sshll.u32 %s1081_s10, 4  ;;  %s1082_s15 = smov 128   ;;  %s24_s11 = int_to_ptr.vmem [resolvable:$true] %s23_s11 }
   0x6   :  { %s1083_s16 = smov 8   ;;  %s1084_s7 = smov [#allocation7]  }
   0x7   :  { %29 = dma.hbm_to_vmem [thread:$0]  %s22_s9, 1024, %s24_s11, [#allocation6], %s1082_s15, %s1082_s15, %s1083_s16  }
   0x8   :  { %s38_s17 = sshll.u32 %s1084_s7, 4  ;;  %s39_s17 = int_to_ptr.vmem [resolvable:$true] %s38_s17 }
   0x9   :  { %44 = dma.hbm_to_vmem [thread:$0]  %s37_s14, 512, %s39_s17, [#allocation8], %s1082_s15, %s1082_s15, %s1083_s16  }
   0xa   :  { %1077 = dma.done.wait [#allocation6], 1024  }
   0xb   :  { %1078 = vsyncadd [#allocation6], 4294966272 }
   0xc   :  { %1079 = dma.done.wait [#allocation8], 512  }
   0xd   :  { %1080 = vsyncadd [#allocation8], 4294966784  ;;  %v72_v1 = vld [vmem:[%s1344_s1 + $0x8] sm:$0xff]  ;;  %v1146_v2 = vld [vmem:[#allocation7 + $0x18] sm:$0xff]  ;;  %vm77_vm0 = vcmask 130048   ;;  %v1085_v8 = vmov 0.0  }
   0xe   :  { %v71_v3 = vld [vmem:[%s1344_s1] sm:$0xff]  ;;  %116 = vmatpush.msra.mxu0 %v72_v1  ;;  %177 = vmatpush.msra.mxu1 %v1146_v2  ;;  %v1152_v4 = vld [vmem:[#allocation7 + $0x10] sm:$0xff]  ;;  %v1154_v6 = vld [vmem:[#allocation7 + $0x8] sm:$0xff]  ;;  %vm143_vm1 = vcmask 785408   ;;  %s1086_s23 = smov 64   ;;  %vm161_vm6 = vcmask 261120  }
   0xf   :  { %v63_v5 = vld [vmem:[#allocation5] sm:$0xff]  ;;  %253 = vmatpush.msra.mxu2 %v1146_v2  ;;  %950 = vmatpush.msra.mxu3 %v72_v1  ;;  %v1185_v9 = vld [vmem:[%s1346_s3] ss:$0 sm:$0xff]  ;;  %s1087_s3 = smov 96   ;;  %v64_v35 = vld [vmem:[#allocation5 + $0x8] sm:$0xff] }
  0x10   :  { %v1156_v7 = vld [vmem:[#allocation7] sm:$0xff]  ;;  %117 = vmatpush.msra.mxu0 %v71_v3  ;;  %178 = vmatpush.msra.mxu1 %v1152_v4  ;;  %v964_v12 = vld [vmem:[%s1347_s4] ss:$0 sm:$0xff] }
  0x11   :  { %927 = vmatmul.msk.f32.vlgmr.msra.gmra.mxu0 %vm77_vm0, %v63_v5  ;;  %254 = vmatpush.msra.mxu2 %v1152_v4  ;;  %v965_v44 = vld [vmem:[%s1347_s4] ss:$0 sm:$0xff]  ;;  %v68_v5 = vld [vmem:[#allocation5 + $0x28] sm:$0xff] }
  0x12   :  { %179 = vmatpush.msra.mxu1 %v1154_v6  ;;  %951 = vmatpush.msra.mxu3 %v71_v3 }
  0x13   :  { %255 = vmatpush.msra.mxu2 %v1154_v6  ;;  %932 = vmatmul.msk.f32.vlgmr.msra.gmra.mxu3 %vm77_vm0, %v68_v5 }
  0x14   :  { %330 = vmatpush.msrb.mxu3 %v1146_v2  ;;  %180 = vmatpush.msra.mxu1 %v1156_v7 }
  0x15   :  { %181 = vmatmul.f32.vlgmr.msra.gmra.mxu1 %v1085_v8  ;;  %256 = vmatpush.msra.mxu2 %v1156_v7  ;;  %v65_v8 = vld [vmem:[#allocation5 + $0x10] sm:$0xff] }
  0x16   :  { %331 = vmatpush.msrb.mxu3 %v1152_v4  ;;  %407 = vmatpush.msrb.mxu1 %v1146_v2 }
  0x17   :  { %484 = vmatpush.msrb.mxu2 %v1146_v2 }
  0x18   :  { %332 = vmatpush.msrb.mxu3 %v1154_v6  ;;  %408 = vmatpush.msrb.mxu1 %v1152_v4 }
  0x19   :  { %485 = vmatpush.msrb.mxu2 %v1152_v4  ;;  %928 = vmatmul.msk.f32.gmra.mxu0 %vm77_vm0, %v64_v35 }
  0x1a   :  { %333 = vmatpush.msrb.mxu3 %v1156_v7  ;;  %409 = vmatpush.msrb.mxu1 %v1154_v6 }
  0x1b   :  { %486 = vmatpush.msrb.mxu2 %v1154_v6 }
  0x1c   :  { %410 = vmatpush.msrb.mxu1 %v1156_v7  ;;  %561 = vmatpush.msra.mxu3 %v1146_v2 }
  0x1d   :  { %487 = vmatpush.msrb.mxu2 %v1156_v7 }
  0x1e   :  { %638 = vmatpush.msra.mxu1 %v1146_v2  ;;  %562 = vmatpush.msra.mxu3 %v1152_v4 }
  0x20   :  { %639 = vmatpush.msra.mxu1 %v1152_v4  ;;  %563 = vmatpush.msra.mxu3 %v1154_v6 }
  0x21   :  { %929 = vmatmul.msk.f32.gmra.mxu0 %vm77_vm0, %v65_v8 }
  0x22   :  { %640 = vmatpush.msra.mxu1 %v1154_v6  ;;  %564 = vmatpush.msra.mxu3 %v1156_v7 }
  0x24   :  { %641 = vmatpush.msra.mxu1 %v1156_v7 }
  0x8e   :  { %v119_v10 = vpop.f32.mrf.mxu0 }
  0x8f   :  { %v120_v11 = vadd.f32 %v1185_v9, %v119_v10  ;;  %v69_v10 = vld [vmem:[#allocation5 + $0x30] sm:$0xff] }
  0x90   :  { %933 = vmatmul.msk.f32.gmra.mxu3 %vm77_vm0, %v69_v10 }
  0x91   :  { %144 = vst.msk [vmem:[#allocation2] sm:$0xff] %vm143_vm1, %v120_v11  ;;  %v70_v11 = vld [vmem:[#allocation5 + $0x38] sm:$0xff] }
  0x92   :  { %v182_v13 = vpop.f32.mrf.mxu1 }
  0x93   :  { %v183_v14 = vadd.f32 %v964_v12, %v182_v13 }
  0x95   :  { %206 = vrot.lane.b32.xlu0 %v183_v14, %s1086_s23 }
  0x96   :  { %v122_v41 = vpop.f32.mrf.mxu0 }
  0x97   :  { %v123_v42 = vadd.f32 %v1185_v9, %v122_v41 }
  0x98   :  { %v152_v15 = vld [vmem:[#allocation2] sm:$0xff]  ;;  %934 = vmatmul.msk.f32.gmra.mxu3 %vm77_vm0, %v70_v11 }
  0x99   :  { %v185_v16 = vadd.f32 %v183_v14, %v152_v15  ;;  %145 = vst.msk [vmem:[#allocation2 + $0x8] sm:$0xff] %vm143_vm1, %v123_v42 }
  0x9b   :  { %v935_v17 = vmul.f32 -1.442695, %v185_v16 }
  0x9d   :  { %981 = vpow2.f32 %v935_v17 }
  0xa0   :  { %v230_v47 = vld [vmem:[#allocation2 + $0x8] sm:$0xff] }
  0xa3   :  { %v982_v18 = vpop.eup %981 }
  0xa4   :  { %v189_v19 = vadd.f32 1.0, %v982_v18 }
  0xa6   :  { %983 = vrcp.f32 %v189_v19  ;;  %v201_v25 = vand.u32 2147483648, %v189_v19  ;;  %vm195_vm3 = vweird.f32 %v189_v19  ;;  %v199_v26 = vand.u32 2147483647, %v189_v19 }
  0xa8   :  { %v202_v28 = vor.u32 1.1754944e-38, %v201_v25  ;;  %vm200_vm5 = vcmp.eq.f32.partialorder %v199_v26, 8.507059e+37 }
  0xac   :  { %v984_v20 = vpop.eup %983 }
  0xad   :  { %v191_v21 = vmul.f32 %v984_v20, %v189_v19  ;;  %vm196_vm2 = vweird.f32 %v984_v20 }
  0xae   :  { %vm197_vm4 = vmor %vm195_vm3, %vm196_vm2 }
  0xaf   :  { %v192_v22 = vsub.f32 1.0, %v191_v21 }
  0xb1   :  { %v193_v23 = vmul.f32 %v984_v20, %v192_v22  ;;  %v966_v22 = vld [vmem:[%s1347_s4] ss:$0 sm:$0xff] }
  0xb3   :  { %v194_v24 = vadd.f32 %v984_v20, %v193_v23 }
  0xb5   :  { %v198_v27 = vsel %vm197_vm4, %v984_v20, %v194_v24 }
  0xb6   :  { %v203_v30 = vsel %vm200_vm5, %v202_v28, %v198_v27 }
  0xb7   :  { %v216_v36 = vsub.f32 1.0, %v203_v30  ;;  %v222_v38 = vmul.f32 0.0, %v203_v30 }
 0x107   :  { %v207_v29 = vpop.permute.xlu0 %206 }
 0x108   :  { %v209_v31 = vmul.f32 %v207_v29, %v203_v30 }
 0x10a   :  { %211 = vrot.lane.b32.xlu0 %v209_v31, %s1086_s23 }
 0x17c   :  { %v212_v32 = vpop.permute.xlu0 %211 }
 0x17d   :  { %v214_v33 = vadd.f32 %v212_v32, %v152_v15 }
 0x17f   :  { %985 = vtanh.f32 %v214_v33 }
 0x185   :  { %v986_v34 = vpop.eup %985 }
 0x186   :  { %218 = vrot.lane.b32.xlu1 %v986_v34, %s1087_s3 }
 0x1f8   :  { %v219_v37 = vpop.permute.xlu1 %218 }
 0x1f9   :  { %v221_v39 = vmul.f32 %v219_v37, %v216_v36 }
 0x1fb   :  { %v223_v40 = vadd.f32 %v222_v38, %v221_v39 }
 0x1fd   :  { %225 = vrot.lane.b32.xlu1 %v223_v40, %s1087_s3 }
 0x26f   :  { %v226_v43 = vpop.permute.xlu1 %225 }
 0x270   :  { %228 = vst.msk [vmem:[#allocation3] sm:$0xff] %vm161_vm6, %v226_v43  ;;  %936 = vmatmul.msk.f32.vlgmr.msra.gmra.mxu2 %vm161_vm6, %v226_v43 }
 0x271   :  { %715 = vmatpush.msra.mxu2 %v1146_v2  ;;  %v125_v2 = vpop.f32.mrf.mxu0 }
 0x273   :  { %716 = vmatpush.msra.mxu2 %v1152_v4  ;;  %v126_v4 = vadd.f32 %v1185_v9, %v125_v2 }
 0x275   :  { %717 = vmatpush.msra.mxu2 %v1154_v6  ;;  %146 = vst.msk [vmem:[#allocation2 + $0x10] sm:$0xff] %vm143_vm1, %v126_v4  ;;  %v134_v6 = vpop.f32.mrf.mxu3  ;;  %v67_v4 = vld [vmem:[#allocation5 + $0x20] sm:$0xff] }
 0x277   :  { %718 = vmatpush.msra.mxu2 %v1156_v7  ;;  %v135_v7 = vadd.f32 %v1185_v9, %v134_v6 }
 0x279   :  { %149 = vst.msk [vmem:[#allocation2 + $0x28] sm:$0xff] %vm143_vm1, %v135_v7 }
 0x27c   :  { %v307_v25 = vld [vmem:[#allocation2 + $0x10] sm:$0xff] }
 0x27d   :  { %v137_v17 = vpop.f32.mrf.mxu3 }
 0x27e   :  { %v138_v18 = vadd.f32 %v1185_v9, %v137_v17 }
 0x280   :  { %150 = vst.msk [vmem:[#allocation2 + $0x30] sm:$0xff] %vm143_vm1, %v138_v18 }
 0x285   :  { %v140_v20 = vpop.f32.mrf.mxu3 }
 0x286   :  { %v141_v21 = vadd.f32 %v1185_v9, %v140_v20 }
 0x288   :  { %151 = vst.msk [vmem:[#allocation2 + $0x38] sm:$0xff] %vm143_vm1, %v141_v21 }
 0x2f3   :  { %v258_v45 = vpop.f32.mrf.mxu2 }
 0x2f4   :  { %v259_v46 = vadd.f32 %v965_v44, %v258_v45  ;;  %v66_v45 = vld [vmem:[#allocation5 + $0x18] sm:$0xff] }
 0x2f5   :  { %930 = vmatmul.msk.f32.gmra.mxu0 %vm77_vm0, %v66_v45 }
 0x2f6   :  { %282 = vrot.lane.b32.xlu2 %v259_v46, %s1086_s23  ;;  %v261_v48 = vadd.f32 %v259_v46, %v230_v47 }
 0x2f8   :  { %v937_v49 = vmul.f32 -1.442695, %v261_v48 }
 0x2fa   :  { %987 = vpow2.f32 %v937_v49 }
 0x2fd   :  { %931 = vmatmul.msk.f32.gmra.mxu0 %vm77_vm0, %v67_v4 }
 0x300   :  { %v988_v50 = vpop.eup %987 }
 0x301   :  { %v265_v51 = vadd.f32 1.0, %v988_v50 }
 0x303   :  { %989 = vrcp.f32 %v265_v51  ;;  %v277_v57 = vand.u32 2147483648, %v265_v51  ;;  %vm271_vm8 = vweird.f32 %v265_v51  ;;  %v275_v58 = vand.u32 2147483647, %v265_v51 }
 0x305   :  { %v278_v60 = vor.u32 1.1754944e-38, %v277_v57  ;;  %vm276_vm10 = vcmp.eq.f32.partialorder %v275_v58, 8.507059e+37 }
 0x309   :  { %v990_v52 = vpop.eup %989 }
 0x30a   :  { %v267_v53 = vmul.f32 %v990_v52, %v265_v51  ;;  %vm272_vm7 = vweird.f32 %v990_v52 }
 0x30b   :  { %vm273_vm9 = vmor %vm271_vm8, %vm272_vm7 }
 0x30c   :  { %v268_v54 = vsub.f32 1.0, %v267_v53 }
 0x30e   :  { %v269_v55 = vmul.f32 %v990_v52, %v268_v54  ;;  %v967_v54 = vld [vmem:[%s1347_s4] ss:$0 sm:$0xff] }
 0x310   :  { %v270_v56 = vadd.f32 %v990_v52, %v269_v55 }
 0x312   :  { %v274_v59 = vsel %vm273_vm9, %v990_v52, %v270_v56 }
 0x313   :  { %v279_v62 = vsel %vm276_vm10, %v278_v60, %v274_v59 }
 0x314   :  { %v292_v12 = vsub.f32 1.0, %v279_v62  ;;  %v298_v14 = vmul.f32 %v279_v62, %v223_v40 }
 0x350   :  { %v283_v61 = vpop.permute.xlu2 %282 }
 0x351   :  { %v285_v63 = vmul.f32 %v283_v61, %v279_v62 }
 0x353   :  { %287 = vrot.lane.b32.xlu2 %v285_v63, %s1086_s23 }
 0x372   :  { %v128_v52 = vpop.f32.mrf.mxu0 }
 0x373   :  { %v129_v53 = vadd.f32 %v1185_v9, %v128_v52 }
 0x375   :  { %147 = vst.msk [vmem:[#allocation2 + $0x18] sm:$0xff] %vm143_vm1, %v129_v53 }
 0x37a   :  { %v131_v20 = vpop.f32.mrf.mxu0 }
 0x37b   :  { %v132_v21 = vadd.f32 %v1185_v9, %v131_v20  ;;  %v615_v20 = vld [vmem:[#allocation2 + $0x30] sm:$0xff] }
 0x37c   :  { %v384_v57 = vld [vmem:[#allocation2 + $0x18] sm:$0xff] }
 0x37d   :  { %148 = vst.msk [vmem:[#allocation2 + $0x20] sm:$0xff] %vm143_vm1, %v132_v21 }
 0x3ad   :  { %v288_v0 = vpop.permute.xlu2 %287 }
 0x3ae   :  { %v290_v1 = vadd.f32 %v288_v0, %v230_v47 }
 0x3b0   :  { %991 = vtanh.f32 %v290_v1 }
 0x3b6   :  { %v992_v3 = vpop.eup %991 }
 0x3b7   :  { %294 = vrot.lane.b32.xlu0 %v992_v3, %s1087_s3 }
 0x429   :  { %v295_v13 = vpop.permute.xlu0 %294 }
 0x42a   :  { %v297_v15 = vmul.f32 %v295_v13, %v292_v12 }
 0x42c   :  { %v299_v16 = vadd.f32 %v298_v14, %v297_v15 }
 0x42e   :  { %301 = vrot.lane.b32.xlu1 %v299_v16, %s1087_s3 }
 0x4a0   :  { %v302_v19 = vpop.permute.xlu1 %301 }
 0x4a1   :  { %305 = vst.msk [vmem:[#allocation3 + $0x8] sm:$0xff] %vm161_vm6, %v302_v19  ;;  %938 = vmatmul.msk.f32.vlgmr.msrb.gmra.mxu3 %vm161_vm6, %v302_v19 }
 0x524   :  { %v335_v23 = vpop.f32.mrf.mxu3 }
 0x525   :  { %v336_v24 = vadd.f32 %v966_v22, %v335_v23  ;;  %v968_v23 = vld [vmem:[%s1347_s4] ss:$0 sm:$0xff] }
 0x527   :  { %359 = vrot.lane.b32.xlu2 %v336_v24, %s1086_s23  ;;  %v338_v26 = vadd.f32 %v336_v24, %v307_v25 }
 0x529   :  { %v939_v27 = vmul.f32 -1.442695, %v338_v26  ;;  %v461_v26 = vld [vmem:[#allocation2 + $0x20] sm:$0xff] }
 0x52b   :  { %993 = vpow2.f32 %v939_v27 }
 0x531   :  { %v994_v28 = vpop.eup %993 }
 0x532   :  { %v342_v29 = vadd.f32 1.0, %v994_v28 }
 0x534   :  { %995 = vrcp.f32 %v342_v29  ;;  %v354_v35 = vand.u32 2147483648, %v342_v29  ;;  %vm348_vm12 = vweird.f32 %v342_v29  ;;  %v352_v36 = vand.u32 2147483647, %v342_v29 }
 0x536   :  { %v355_v38 = vor.u32 1.1754944e-38, %v354_v35  ;;  %vm353_vm14 = vcmp.eq.f32.partialorder %v352_v36, 8.507059e+37 }
 0x53a   :  { %v996_v30 = vpop.eup %995 }
 0x53b   :  { %v344_v31 = vmul.f32 %v996_v30, %v342_v29  ;;  %vm349_vm11 = vweird.f32 %v996_v30 }
 0x53c   :  { %vm350_vm13 = vmor %vm348_vm12, %vm349_vm11 }
 0x53d   :  { %v345_v32 = vsub.f32 1.0, %v344_v31 }
 0x53f   :  { %v346_v33 = vmul.f32 %v996_v30, %v345_v32 }
 0x541   :  { %v347_v34 = vadd.f32 %v996_v30, %v346_v33 }
 0x543   :  { %v351_v37 = vsel %vm350_vm13, %v996_v30, %v347_v34 }
 0x544   :  { %v356_v40 = vsel %vm353_vm14, %v355_v38, %v351_v37 }
 0x545   :  { %v369_v46 = vsub.f32 1.0, %v356_v40  ;;  %v375_v48 = vmul.f32 %v356_v40, %v299_v16 }
 0x581   :  { %v360_v39 = vpop.permute.xlu2 %359 }
 0x582   :  { %v362_v41 = vmul.f32 %v360_v39, %v356_v40 }
 0x584   :  { %364 = vrot.lane.b32.xlu0 %v362_v41, %s1086_s23 }
 0x5f6   :  { %v365_v42 = vpop.permute.xlu0 %364 }
 0x5f7   :  { %v367_v43 = vadd.f32 %v365_v42, %v307_v25 }
 0x5f9   :  { %997 = vtanh.f32 %v367_v43 }
 0x5ff   :  { %v998_v44 = vpop.eup %997 }
 0x600   :  { %371 = vrot.lane.b32.xlu1 %v998_v44, %s1087_s3 }
 0x672   :  { %v372_v47 = vpop.permute.xlu1 %371 }
 0x673   :  { %v374_v49 = vmul.f32 %v372_v47, %v369_v46 }
 0x675   :  { %v376_v50 = vadd.f32 %v375_v48, %v374_v49 }
 0x677   :  { %378 = vrot.lane.b32.xlu2 %v376_v50, %s1087_s3 }
 0x6d1   :  { %v379_v51 = vpop.permute.xlu2 %378 }
 0x6d2   :  { %382 = vst.msk [vmem:[#allocation3 + $0x10] sm:$0xff] %vm161_vm6, %v379_v51  ;;  %940 = vmatmul.msk.f32.vlgmr.msrb.gmra.mxu1 %vm161_vm6, %v379_v51  ;;  %v969_v51 = vld [vmem:[%s1347_s4] ss:$0 sm:$0xff] }
 0x74f   :  { %v412_v55 = vpop.f32.mrf.mxu1 }
 0x750   :  { %v413_v56 = vadd.f32 %v967_v54, %v412_v55  ;;  %v538_v54 = vld [vmem:[#allocation2 + $0x28] sm:$0xff] }
 0x752   :  { %436 = vrot.lane.b32.xlu0 %v413_v56, %s1086_s23  ;;  %v415_v58 = vadd.f32 %v413_v56, %v384_v57 }
 0x754   :  { %v941_v59 = vmul.f32 -1.442695, %v415_v58 }
 0x756   :  { %999 = vpow2.f32 %v941_v59 }
 0x75c   :  { %v1000_v60 = vpop.eup %999 }
 0x75d   :  { %v419_v61 = vadd.f32 1.0, %v1000_v60 }
 0x75f   :  { %1001 = vrcp.f32 %v419_v61  ;;  %v431_v5 = vand.u32 2147483648, %v419_v61  ;;  %vm425_vm2 = vweird.f32 %v419_v61  ;;  %v429_v8 = vand.u32 2147483647, %v419_v61 }
 0x761   :  { %v432_v11 = vor.u32 1.1754944e-38, %v431_v5  ;;  %vm430_vm4 = vcmp.eq.f32.partialorder %v429_v8, 8.507059e+37 }
 0x765   :  { %v1002_v62 = vpop.eup %1001 }
 0x766   :  { %v421_v63 = vmul.f32 %v1002_v62, %v419_v61  ;;  %vm426_vm15 = vweird.f32 %v1002_v62 }
 0x767   :  { %vm427_vm3 = vmor %vm425_vm2, %vm426_vm15 }
 0x768   :  { %v422_v0 = vsub.f32 1.0, %v421_v63 }
 0x76a   :  { %v423_v1 = vmul.f32 %v1002_v62, %v422_v0 }
 0x76c   :  { %v424_v3 = vadd.f32 %v1002_v62, %v423_v1 }
 0x76e   :  { %v428_v10 = vsel %vm427_vm3, %v1002_v62, %v424_v3 }
 0x76f   :  { %v433_v13 = vsel %vm430_vm4, %v432_v11, %v428_v10 }
 0x770   :  { %v446_v6 = vsub.f32 1.0, %v433_v13  ;;  %v452_v17 = vmul.f32 %v433_v13, %v376_v50 }
 0x7c4   :  { %v437_v12 = vpop.permute.xlu0 %436 }
 0x7c5   :  { %v439_v14 = vmul.f32 %v437_v12, %v433_v13 }
 0x7c7   :  { %441 = vrot.lane.b32.xlu1 %v439_v14, %s1086_s23 }
 0x839   :  { %v442_v15 = vpop.permute.xlu1 %441 }
 0x83a   :  { %v444_v16 = vadd.f32 %v442_v15, %v384_v57 }
 0x83c   :  { %1003 = vtanh.f32 %v444_v16 }
 0x842   :  { %v1004_v2 = vpop.eup %1003 }
 0x843   :  { %448 = vrot.lane.b32.xlu2 %v1004_v2, %s1087_s3 }
 0x89d   :  { %v449_v7 = vpop.permute.xlu2 %448 }
 0x89e   :  { %v451_v18 = vmul.f32 %v449_v7, %v446_v6 }
 0x8a0   :  { %v453_v19 = vadd.f32 %v452_v17, %v451_v18  ;;  %v970_v17 = vld [vmem:[%s1347_s4] ss:$0 sm:$0xff] }
 0x8a2   :  { %455 = vrot.lane.b32.xlu0 %v453_v19, %s1087_s3 }
 0x914   :  { %v456_v22 = vpop.permute.xlu0 %455 }
 0x915   :  { %459 = vst.msk [vmem:[#allocation3 + $0x18] sm:$0xff] %vm161_vm6, %v456_v22  ;;  %942 = vmatmul.msk.f32.vlgmr.msrb.gmra.mxu2 %vm161_vm6, %v456_v22 }
 0x998   :  { %v489_v24 = vpop.f32.mrf.mxu2 }
 0x999   :  { %v490_v25 = vadd.f32 %v968_v23, %v489_v24 }
 0x99b   :  { %513 = vrot.lane.b32.xlu1 %v490_v25, %s1086_s23  ;;  %v492_v27 = vadd.f32 %v490_v25, %v461_v26 }
 0x99d   :  { %v943_v28 = vmul.f32 -1.442695, %v492_v27 }
 0x99f   :  { %1005 = vpow2.f32 %v943_v28 }
 0x9a5   :  { %v1006_v9 = vpop.eup %1005 }
 0x9a6   :  { %v496_v29 = vadd.f32 1.0, %v1006_v9 }
 0x9a8   :  { %1007 = vrcp.f32 %v496_v29  ;;  %v508_v35 = vand.u32 2147483648, %v496_v29  ;;  %vm502_vm1 = vweird.f32 %v496_v29  ;;  %v506_v36 = vand.u32 2147483647, %v496_v29 }
 0x9aa   :  { %v509_v38 = vor.u32 1.1754944e-38, %v508_v35  ;;  %vm507_vm7 = vcmp.eq.f32.partialorder %v506_v36, 8.507059e+37 }
 0x9ae   :  { %v1008_v30 = vpop.eup %1007 }
 0x9af   :  { %v498_v31 = vmul.f32 %v1008_v30, %v496_v29  ;;  %vm503_vm0 = vweird.f32 %v1008_v30 }
 0x9b0   :  { %vm504_vm5 = vmor %vm502_vm1, %vm503_vm0 }
 0x9b1   :  { %v499_v32 = vsub.f32 1.0, %v498_v31 }
 0x9b3   :  { %v500_v33 = vmul.f32 %v1008_v30, %v499_v32 }
 0x9b5   :  { %v501_v34 = vadd.f32 %v1008_v30, %v500_v33 }
 0x9b7   :  { %v505_v37 = vsel %vm504_vm5, %v1008_v30, %v501_v34 }
 0x9b8   :  { %v510_v40 = vsel %vm507_vm7, %v509_v38, %v505_v37 }
 0x9b9   :  { %v523_v45 = vsub.f32 1.0, %v510_v40  ;;  %v529_v47 = vmul.f32 %v510_v40, %v453_v19 }
 0xa0d   :  { %v514_v39 = vpop.permute.xlu1 %513 }
 0xa0e   :  { %v516_v41 = vmul.f32 %v514_v39, %v510_v40 }
 0xa10   :  { %518 = vrot.lane.b32.xlu2 %v516_v41, %s1086_s23 }
 0xa6a   :  { %v519_v42 = vpop.permute.xlu2 %518 }
 0xa6b   :  { %v521_v43 = vadd.f32 %v519_v42, %v461_v26 }
 0xa6d   :  { %1009 = vtanh.f32 %v521_v43 }
 0xa73   :  { %v1010_v44 = vpop.eup %1009 }
 0xa74   :  { %525 = vrot.lane.b32.xlu0 %v1010_v44, %s1087_s3 }
 0xae6   :  { %v526_v46 = vpop.permute.xlu0 %525 }
 0xae7   :  { %v528_v48 = vmul.f32 %v526_v46, %v523_v45  ;;  %v1088_v45 = vmov 0   ;;  %v971_v46 = vld [vmem:[%s1347_s4] ss:$0 sm:$0xff] }
 0xae8   :  { %962 = vset.pattern.permute.xlu1 %v1088_v45  ;;  %960 = vset.pattern.permute.xlu2 %v1088_v45 }
 0xae9   :  { %v530_v49 = vadd.f32 %v529_v47, %v528_v48  ;;  %961 = vset.pattern.permute.xlu0 %v1088_v45 }
 0xaeb   :  { %532 = vrot.lane.b32.xlu1 %v530_v49, %s1087_s3 }
 0xb5d   :  { %v533_v50 = vpop.permute.xlu1 %532 }
 0xb5e   :  { %536 = vst.msk [vmem:[#allocation3 + $0x20] sm:$0xff] %vm161_vm6, %v533_v50  ;;  %944 = vmatmul.msk.f32.vlgmr.msra.gmra.mxu3 %vm161_vm6, %v533_v50 }
 0xbe1   :  { %v566_v52 = vpop.f32.mrf.mxu3 }
 0xbe2   :  { %v567_v53 = vadd.f32 %v969_v51, %v566_v52 }
 0xbe4   :  { %590 = vrot.lane.b32.xlu2 %v567_v53, %s1086_s23  ;;  %v569_v55 = vadd.f32 %v567_v53, %v538_v54  ;;  %v972_v53 = vld [vmem:[%s1349_s6 + $0x2] ss:$0 sm:$0xff] }
 0xbe6   :  { %v945_v56 = vmul.f32 -1.442695, %v569_v55 }
 0xbe8   :  { %1011 = vpow2.f32 %v945_v56 }
 0xbee   :  { %v1012_v57 = vpop.eup %1011 }
 0xbef   :  { %v573_v58 = vadd.f32 1.0, %v1012_v57 }
 0xbf1   :  { %1013 = vrcp.f32 %v573_v58  ;;  %v585_v0 = vand.u32 2147483648, %v573_v58  ;;  %vm579_vm9 = vweird.f32 %v573_v58  ;;  %v583_v1 = vand.u32 2147483647, %v573_v58 }
 0xbf3   :  { %v586_v5 = vor.u32 1.1754944e-38, %v585_v0  ;;  %vm584_vm11 = vcmp.eq.f32.partialorder %v583_v1, 8.507059e+37 }
 0xbf7   :  { %v1014_v59 = vpop.eup %1013 }
 0xbf8   :  { %v575_v60 = vmul.f32 %v1014_v59, %v573_v58  ;;  %vm580_vm8 = vweird.f32 %v1014_v59 }
 0xbf9   :  { %vm581_vm10 = vmor %vm579_vm9, %vm580_vm8 }
 0xbfa   :  { %v576_v61 = vsub.f32 1.0, %v575_v60 }
 0xbfc   :  { %v577_v62 = vmul.f32 %v1014_v59, %v576_v61 }
 0xbfe   :  { %v578_v63 = vadd.f32 %v1014_v59, %v577_v62 }
 0xc00   :  { %v582_v3 = vsel %vm581_vm10, %v1014_v59, %v578_v63 }
 0xc01   :  { %v587_v10 = vsel %vm584_vm11, %v586_v5, %v582_v3 }
 0xc02   :  { %v600_v15 = vsub.f32 1.0, %v587_v10  ;;  %v606_v2 = vmul.f32 %v587_v10, %v530_v49  ;;  %v768_v49 = vld [vmem:[%s1348_s5] sm:$0xff] }
 0xc03   :  { %vm771_vm2 = vcmp.gt.s32.totalorder %v768_v49, 2  ;;  %vm773_vm3 = vcmp.gt.s32.totalorder %v768_v49, 4  ;;  %vm776_vm4 = vcmp.gt.s32.totalorder %v768_v49, 7  ;;  %vm769_vm8 = vcmp.gt.s32.totalorder %v768_v49, 0 }
 0xc04   :  { %v787_v50 = vsel %vm771_vm2, 1, %v1088_v45  ;;  %v789_v51 = vsel %vm773_vm3, 1, %v1088_v45  ;;  %v792_v52 = vsel %vm776_vm4, 1, %v1088_v45  ;;  %vm772_vm9 = vcmp.gt.s32.totalorder %v768_v49, 3 }
 0xc05   :  { %vm774_vm10 = vcmp.gt.s32.totalorder %v768_v49, 5  ;;  %vm770_vm11 = vcmp.gt.s32.totalorder %v768_v49, 1 }
 0xc3e   :  { %v591_v8 = vpop.permute.xlu2 %590 }
 0xc3f   :  { %v593_v11 = vmul.f32 %v591_v8, %v587_v10 }
 0xc41   :  { %595 = vrot.lane.b32.xlu0 %v593_v11, %s1086_s23 }
 0xcb3   :  { %v596_v12 = vpop.permute.xlu0 %595 }
 0xcb4   :  { %v598_v13 = vadd.f32 %v596_v12, %v538_v54  ;;  %v692_v54 = vld [vmem:[#allocation2 + $0x38] sm:$0xff]  ;;  %v785_v12 = vsel %vm769_vm8, 1, %v1088_v45 }
 0xcb6   :  { %1015 = vtanh.f32 %v598_v13  ;;  %v788_v13 = vsel %vm772_vm9, 1, %v1088_v45 }
 0xcbc   :  { %v1016_v14 = vpop.eup %1015 }
 0xcbd   :  { %602 = vrot.lane.b32.xlu1 %v1016_v14, %s1087_s3  ;;  %v790_v14 = vsel %vm774_vm10, 1, %v1088_v45 }
 0xd2f   :  { %v603_v16 = vpop.permute.xlu1 %602 }
 0xd30   :  { %v605_v4 = vmul.f32 %v603_v16, %v600_v15  ;;  %v973_v15 = vld [vmem:[%s1349_s6] ss:$0 sm:$0xff]  ;;  %v974_v16 = vld [vmem:[%s1349_s6 + $0x3] ss:$0 sm:$0xff] }
 0xd32   :  { %v607_v6 = vadd.f32 %v606_v2, %v605_v4 }
 0xd34   :  { %609 = vrot.lane.b32.xlu2 %v607_v6, %s1087_s3 }
 0xd8e   :  { %v610_v7 = vpop.permute.xlu2 %609 }
 0xd8f   :  { %613 = vst.msk [vmem:[#allocation3 + $0x28] sm:$0xff] %vm161_vm6, %v610_v7  ;;  %946 = vmatmul.msk.f32.vlgmr.msra.gmra.mxu1 %vm161_vm6, %v610_v7  ;;  %v977_v7 = vld [vmem:[%s1349_s6 + $0x6] ss:$0 sm:$0xff] }
 0xe0c   :  { %v643_v18 = vpop.f32.mrf.mxu1 }
 0xe0d   :  { %v644_v19 = vadd.f32 %v970_v17, %v643_v18  ;;  %v786_v17 = vsel %vm770_vm11, 1, %v1088_v45 }
 0xe0f   :  { %667 = vrot.lane.b32.xlu0 %v644_v19, %s1086_s23  ;;  %v646_v21 = vadd.f32 %v644_v19, %v615_v20  ;;  %v975_v19 = vld [vmem:[%s1349_s6 + $0x1] ss:$0 sm:$0xff] }
 0xe11   :  { %v947_v22 = vmul.f32 -1.442695, %v646_v21  ;;  %v978_v21 = vld [vmem:[%s1349_s6 + $0x7] ss:$0 sm:$0xff] }
 0xe13   :  { %1017 = vpow2.f32 %v947_v22 }
 0xe19   :  { %v1018_v23 = vpop.eup %1017 }
 0xe1a   :  { %v650_v24 = vadd.f32 1.0, %v1018_v23 }
 0xe1c   :  { %1019 = vrcp.f32 %v650_v24  ;;  %v662_v29 = vand.u32 2147483648, %v650_v24  ;;  %vm656_vm13 = vweird.f32 %v650_v24  ;;  %v660_v30 = vand.u32 2147483647, %v650_v24 }
 0xe1e   :  { %v663_v32 = vor.u32 1.1754944e-38, %v662_v29  ;;  %vm661_vm15 = vcmp.eq.f32.partialorder %v660_v30, 8.507059e+37 }
 0xe22   :  { %v1020_v25 = vpop.eup %1019 }
 0xe23   :  { %v652_v26 = vmul.f32 %v1020_v25, %v650_v24  ;;  %vm657_vm12 = vweird.f32 %v1020_v25 }
 0xe24   :  { %vm658_vm14 = vmor %vm656_vm13, %vm657_vm12  ;;  %vm775_vm12 = vcmp.gt.s32.totalorder %v768_v49, 6 }
 0xe25   :  { %v653_v27 = vsub.f32 1.0, %v652_v26  ;;  %v791_v18 = vsel %vm775_vm12, 1, %v1088_v45  ;;  %v779_v45 = vld [vmem:[#allocation3 + $0x10] sm:$0xff] }
 0xe27   :  { %v654_v28 = vmul.f32 %v1020_v25, %v653_v27  ;;  %v979_v27 = vld [vmem:[%s1349_s6 + $0x5] ss:$0 sm:$0xff] }
 0xe29   :  { %v655_v9 = vadd.f32 %v1020_v25, %v654_v28  ;;  %v980_v28 = vld [vmem:[#allocation4] ss:$0 sm:$0xff] }
 0xe2b   :  { %v659_v31 = vsel %vm658_vm14, %v1020_v25, %v655_v9 }
 0xe2c   :  { %v664_v34 = vsel %vm661_vm15, %v663_v32, %v659_v31 }
 0xe2d   :  { %v677_v39 = vsub.f32 1.0, %v664_v34  ;;  %v683_v41 = vmul.f32 %v664_v34, %v607_v6 }
 0xe81   :  { %v668_v33 = vpop.permute.xlu0 %667 }
 0xe82   :  { %v670_v35 = vmul.f32 %v668_v33, %v664_v34 }
 0xe84   :  { %672 = vrot.lane.b32.xlu1 %v670_v35, %s1086_s23 }
 0xef6   :  { %v673_v36 = vpop.permute.xlu1 %672 }
 0xef7   :  { %v675_v37 = vadd.f32 %v673_v36, %v615_v20  ;;  %v976_v20 = vld [vmem:[%s1349_s6 + $0x4] ss:$0 sm:$0xff] }
 0xef9   :  { %1021 = vtanh.f32 %v675_v37 }
 0xeff   :  { %v1022_v38 = vpop.eup %1021 }
 0xf00   :  { %679 = vrot.lane.b32.xlu2 %v1022_v38, %s1087_s3  ;;  %v778_v38 = vld [vmem:[#allocation3 + $0x8] sm:$0xff] }
 0xf5a   :  { %v680_v40 = vpop.permute.xlu2 %679 }
 0xf5b   :  { %v682_v42 = vmul.f32 %v680_v40, %v677_v39 }
 0xf5d   :  { %v1278_v43 = vadd.f32 %v683_v41, %v682_v42  ;;  %v777_v41 = vld [vmem:[#allocation3] sm:$0xff] }
 0xf5f   :  { %686 = vrot.lane.b32.xlu0 %v1278_v43, %s1087_s3 }
 0xfd1   :  { %v687_v44 = vpop.permute.xlu0 %686 }
 0xfd2   :  { %690 = vst.msk [vmem:[#allocation3 + $0x30] sm:$0xff] %vm161_vm6, %v687_v44  ;;  %948 = vmatmul.msk.f32.vlgmr.msra.gmra.mxu2 %vm161_vm6, %v687_v44 }
0x1055   :  { %v720_v47 = vpop.f32.mrf.mxu2 }
0x1056   :  { %v721_v48 = vadd.f32 %v971_v46, %v720_v47 }
0x1058   :  { %744 = vrot.lane.b32.xlu1 %v721_v48, %s1086_s23  ;;  %v723_v55 = vadd.f32 %v721_v48, %v692_v54 }
0x105a   :  { %v949_v56 = vmul.f32 -1.442695, %v723_v55  ;;  %v781_v55 = vld [vmem:[#allocation3 + $0x20] sm:$0xff] }
0x105c   :  { %1023 = vpow2.f32 %v949_v56 }
0x1060   :  { %800 = vperm.xlu1 %962, %v787_v50  }
0x1062   :  { %v1024_v57 = vpop.eup %1023 }
0x1063   :  { %v727_v58 = vadd.f32 1.0, %v1024_v57 }
0x1065   :  { %1025 = vrcp.f32 %v727_v58  ;;  %v739_v0 = vand.u32 2147483648, %v727_v58  ;;  %vm733_vm1 = vweird.f32 %v727_v58  ;;  %v737_v1 = vand.u32 2147483647, %v727_v58 }
0x1067   :  { %v740_v5 = vor.u32 1.1754944e-38, %v739_v0  ;;  %vm738_vm7 = vcmp.eq.f32.partialorder %v737_v1, 8.507059e+37 }
0x1068   :  { %806 = vperm.xlu1 %962, %v789_v51  }
0x106b   :  { %v1026_v59 = vpop.eup %1025 }
0x106c   :  { %v729_v60 = vmul.f32 %v1026_v59, %v727_v58  ;;  %vm734_vm0 = vweird.f32 %v1026_v59 }
0x106d   :  { %vm735_vm5 = vmor %vm733_vm1, %vm734_vm0 }
0x106e   :  { %v730_v61 = vsub.f32 1.0, %v729_v60 }
0x1070   :  { %815 = vperm.xlu1 %962, %v792_v52   ;;  %v731_v62 = vmul.f32 %v1026_v59, %v730_v61 }
0x1072   :  { %v732_v63 = vadd.f32 %v1026_v59, %v731_v62  ;;  %v783_v62 = vld [vmem:[#allocation3 + $0x30] sm:$0xff] }
0x1074   :  { %v736_v3 = vsel %vm735_vm5, %v1026_v59, %v732_v63 }
0x1075   :  { %v741_v10 = vsel %vm738_vm7, %v740_v5, %v736_v3  ;;  %v782_v5 = vld [vmem:[#allocation3 + $0x28] sm:$0xff] }
0x1076   :  { %v754_v22 = vsub.f32 1.0, %v741_v10  ;;  %v760_v24 = vmul.f32 %v741_v10, %v1278_v43 }
0x1078   :  { %866 = vperm.xlu1 %962, %v972_v53  }
0x10ca   :  { %v745_v8 = vpop.permute.xlu1 %744 }
0x10cb   :  { %v747_v11 = vmul.f32 %v745_v8, %v741_v10 }
0x10cd   :  { %749 = vrot.lane.b32.xlu2 %v747_v11, %s1086_s23 }
0x10d2   :  { %v801_v29 = vpop.permute.xlu1 %800 }
0x10d3   :  { %vm819_vm15 = vcmp.eq.s32.totalorder %v801_v29, 1 }
0x10d4   :  { %v827_v47 = vsel %vm819_vm15, %v779_v45, 0.0 }
0x10d5   :  { %794 = vperm.xlu2 %960, %v785_v12  }
0x10da   :  { %v807_v32 = vpop.permute.xlu1 %806 }
0x10db   :  { %vm821_vm2 = vcmp.eq.s32.totalorder %v807_v32, 1 }
0x10dc   :  { %v829_v57 = vsel %vm821_vm2, %v781_v55, 0.0 }
0x10dd   :  { %803 = vperm.xlu2 %960, %v788_v13  }
0x10e2   :  { %v816_v35 = vpop.permute.xlu1 %815 }
0x10e3   :  { %vm824_vm1 = vcmp.eq.s32.totalorder %v816_v35, 1 }
0x10e5   :  { %809 = vperm.xlu2 %960, %v790_v14  }
0x10ea   :  { %v867_v39 = vpop.permute.xlu1 %866 }
0x10eb   :  { %v891_v49 = vmul.f32 %v867_v39, %v827_v47 }
0x10ed   :  { %858 = vperm.xlu2 %960, %v973_v15   ;;  %v900_v58 = vsel %vm161_vm6, %v891_v49, 0.0 }
0x10f5   :  { %870 = vperm.xlu2 %960, %v974_v16  }
0x10fd   :  { %882 = vperm.xlu2 %960, %v977_v7  }
0x1127   :  { %v750_v2 = vpop.permute.xlu2 %749 }
0x1128   :  { %v752_v4 = vadd.f32 %v750_v2, %v692_v54  ;;  %v780_v54 = vld [vmem:[#allocation3 + $0x18] sm:$0xff] }
0x112a   :  { %1027 = vtanh.f32 %v752_v4 }
0x112f   :  { %v795_v9 = vpop.permute.xlu2 %794 }
0x1130   :  { %v1028_v6 = vpop.eup %1027  ;;  %vm817_vm14 = vcmp.eq.s32.totalorder %v795_v9, 1 }
0x1131   :  { %756 = vrot.lane.b32.xlu0 %v1028_v6, %s1087_s3  ;;  %v825_v43 = vsel %vm817_vm14, %v777_v41, 0.0 }
0x1137   :  { %v804_v30 = vpop.permute.xlu2 %803 }
0x1138   :  { %vm820_vm3 = vcmp.eq.s32.totalorder %v804_v30, 1 }
0x1139   :  { %797 = vperm.xlu0 %961, %v786_v17   ;;  %v828_v56 = vsel %vm820_vm3, %v780_v54, 0.0 }
0x113f   :  { %v810_v33 = vpop.permute.xlu2 %809 }
0x1140   :  { %vm822_vm0 = vcmp.eq.s32.totalorder %v810_v33, 1 }
0x1141   :  { %812 = vperm.xlu0 %961, %v791_v18   ;;  %v830_v11 = vsel %vm822_vm0, %v782_v5, 0.0 }
0x1147   :  { %v859_v36 = vpop.permute.xlu2 %858 }
0x1148   :  { %v889_v44 = vmul.f32 %v859_v36, %v825_v43 }
0x1149   :  { %862 = vperm.xlu0 %961, %v975_v19  }
0x114a   :  { %v897_v50 = vsel %vm161_vm6, %v889_v44, 0.0 }
0x114f   :  { %v871_v48 = vpop.permute.xlu2 %870 }
0x1150   :  { %v892_v59 = vmul.f32 %v871_v48, %v828_v56 }
0x1151   :  { %874 = vperm.xlu0 %961, %v976_v20  }
0x1152   :  { %v902_v1 = vsel %vm161_vm6, %v892_v59, 0.0 }
0x1157   :  { %v883_v63 = vpop.permute.xlu2 %882 }
0x1159   :  { %886 = vperm.xlu0 %961, %v978_v21  }
0x11a3   :  { %v757_v23 = vpop.permute.xlu0 %756 }
0x11a4   :  { %v759_v25 = vmul.f32 %v757_v23, %v754_v22 }
0x11a6   :  { %v761_v26 = vadd.f32 %v760_v24, %v759_v25 }
0x11a8   :  { %763 = vrot.lane.b32.xlu1 %v761_v26, %s1087_s3 }
0x11ab   :  { %v798_v31 = vpop.permute.xlu0 %797 }
0x11ac   :  { %vm818_vm13 = vcmp.eq.s32.totalorder %v798_v31, 1 }
0x11ad   :  { %v826_v40 = vsel %vm818_vm13, %v778_v38, 0.0 }
0x11b0   :  { %878 = vperm.xlu1 %962, %v979_v27  }
0x11b3   :  { %v813_v34 = vpop.permute.xlu0 %812 }
0x11b4   :  { %vm823_vm4 = vcmp.eq.s32.totalorder %v813_v34, 1 }
0x11b5   :  { %v831_v0 = vsel %vm823_vm4, %v783_v62, 0.0 }
0x11b6   :  { %v895_v13 = vmul.f32 %v883_v63, %v831_v0 }
0x11b8   :  { %916 = vperm.xlu1 %962, %v980_v28   ;;  %v908_v17 = vsel %vm161_vm6, %v895_v13, 0.0 }
0x11bb   :  { %v863_v37 = vpop.permute.xlu0 %862 }
0x11bc   :  { %v890_v42 = vmul.f32 %v863_v37, %v826_v40 }
0x11be   :  { %v898_v46 = vsel %vm161_vm6, %v890_v42, 0.0 }
0x11bf   :  { %v899_v51 = vadd.f32 %v898_v46, %v897_v50 }
0x11c1   :  { %v901_v61 = vadd.f32 %v900_v58, %v899_v51 }
0x11c3   :  { %v875_v52 = vpop.permute.xlu0 %874  ;;  %v903_v8 = vadd.f32 %v902_v1, %v901_v61 }
0x11c4   :  { %v893_v60 = vmul.f32 %v875_v52, %v829_v57 }
0x11c6   :  { %v904_v3 = vsel %vm161_vm6, %v893_v60, 0.0 }
0x11c7   :  { %v905_v16 = vadd.f32 %v904_v3, %v903_v8 }
0x11cb   :  { %v887_v2 = vpop.permute.xlu0 %886 }
0x121a   :  { %v764_v53 = vpop.permute.xlu1 %763 }
0x121b   :  { %767 = vst.msk [vmem:[#allocation3 + $0x38] sm:$0xff] %vm161_vm6, %v764_v53 }
0x1222   :  { %v879_v10 = vpop.permute.xlu1 %878  ;;  %v784_v12 = vld [vmem:[#allocation3 + $0x38] sm:$0xff] }
0x1223   :  { %v894_v14 = vmul.f32 %v879_v10, %v830_v11  ;;  %v832_v15 = vsel %vm824_vm1, %v784_v12, 0.0 }
0x1224   :  { %v896_v6 = vmul.f32 %v887_v2, %v832_v15 }
0x1225   :  { %v906_v4 = vsel %vm161_vm6, %v894_v14, 0.0 }
0x1226   :  { %v907_v7 = vadd.f32 %v906_v4, %v905_v16  ;;  %v910_v19 = vsel %vm161_vm6, %v896_v6, 0.0 }
0x1228   :  { %v909_v18 = vadd.f32 %v908_v17, %v907_v7 }
0x122a   :  { %v917_v20 = vpop.permute.xlu1 %916  ;;  %v911_v21 = vadd.f32 %v910_v19, %v909_v18 }
0x122c   :  { %v919_v22 = vadd.f32 %v917_v20, %v911_v21 }
0x122e   :  { %920 = vst.msk [vmem:[%s1351_s8] sm:$0xff] %vm161_vm6, %v919_v22 }
0x122f   :  { %925 = vsyncpa [#allocation6], 1 }
0x1230   :  { %926 = vsyncpa [#allocation8], 1 }

</bundles_post_ra>
